<compile_context>
chip_gen: v7x
topology: tpu7x:2x2x1
jax: 0.10.0
libtpu: 0.0.40
codegen_flags: <defaults>
</compile_context>

<pallas_src>
import functools

import jax
import jax.numpy as jnp
from jax.experimental import pallas as pl
from jax.experimental.pallas import tpu as pltpu

LANE = 128
TM_CAP = 512                      # upper bound on pooled-position rows per conv tile
VMEM_BUDGET = 24 * 1024 * 1024    # per-block working-set budget (fits v7x 32 MiB scoped)


def _pad_to(n, m):
    return ((n + m - 1) // m) * m


def _cdiv(a, b):
    return -(-a // b)


# ---------------------------------------------------------------------------
# Kernels
# ---------------------------------------------------------------------------
def _conv_elu_pool_kernel(cols_ref, w_ref, b_ref, o_ref):
    """Fused 3x3 conv (single im2col matmul) + 2x2 max-pool + bias + ELU.

    cols_ref: (4, TM, Kp) bf16   4 = positions inside each 2x2 pooling window
    w_ref   : (Kp, Cp)    bf16
    b_ref   : (1, Cp)     f32    zeros when the torch conv has bias=False
    o_ref   : (TM, Cp)    bf16   (epilogue math is f32, cast only at the store)
    """
    four, tm, kp = cols_ref.shape
    cp = o_ref.shape[-1]
    # One MXU matmul for all 4 window positions (TM multiple of 16 -> collapse is free).
    z = jnp.dot(cols_ref[...].reshape(four * tm, kp), w_ref[...],
                preferred_element_type=jnp.float32)
    z = z.reshape(four, tm, cp)
    # 2x2 pool max: three elementwise maxima over leading-axis slices (VPU only).
    m = jnp.maximum(jnp.maximum(z[0], z[1]), jnp.maximum(z[2], z[3]))
    # max/+bias and max/ELU commute exactly -> apply once after the pool.
    m = m + b_ref[...]
    # ELU(alpha=1). exp routes to the EUP slot; the -1 is one VPU op.
    m = jnp.where(m > 0, m, jnp.exp(jnp.minimum(m, 0.0)) - 1.0)
    o_ref[...] = m.astype(o_ref.dtype)


def _conv_elu_pool_fc_softmax_kernel(cols_ref, w_ref, b_ref, wfc_ref, o_ref,
                                     *, head_segments):
    """Last conv layer with the merged FC heads + per-head softmax fused in.

    cols_ref: (4, TM, Kp) bf16   TM rows == (padded) batch samples (spatial is 1x1)
    w_ref   : (Kp, Cp)    bf16   last conv weight
    b_ref   : (1, Cp)     f32
    wfc_ref : (Cp, Dp)    bf16   all linear heads concatenated on the lane dim
    o_ref   : (TM, Dp)    f32    per-head softmax probabilities (lane segments)
    """
    four, tm, kp = cols_ref.shape
    cp = w_ref.shape[-1]
    z = jnp.dot(cols_ref[...].reshape(four * tm, kp), w_ref[...],
                preferred_element_type=jnp.float32)
    z = z.reshape(four, tm, cp)
    m = jnp.maximum(jnp.maximum(z[0], z[1]), jnp.maximum(z[2], z[3]))
    m = m + b_ref[...]
    feats = jnp.where(m > 0, m, jnp.exp(jnp.minimum(m, 0.0)) - 1.0)      # (TM, Cp) f32
    logits = jnp.dot(feats.astype(jnp.bfloat16), wfc_ref[...],
                     preferred_element_type=jnp.float32)                 # (TM, Dp)
    lane = jax.lax.broadcasted_iota(jnp.int32, logits.shape, 1)
    out = jnp.zeros_like(logits)
    for off, d in head_segments:                                         # static, tiny
        mask = (lane >= off) & (lane < off + d)
        masked = jnp.where(mask, logits, -jnp.inf)
        mx = jnp.max(masked, axis=1, keepdims=True)
        e = jnp.exp(masked - mx)                                         # 0 outside head
        s = jnp.sum(e, axis=1, keepdims=True)
        out = out + e / s                                                # exact normalization
    o_ref[...] = out.astype(o_ref.dtype)


# ---------------------------------------------------------------------------
# pallas_call wrappers
# ---------------------------------------------------------------------------
def conv_elu_pool(cols, w2, b2, *, tm):
    """cols: (4, M2p, Kp) bf16, w2: (Kp, Cp) bf16, b2: (1, Cp) f32 -> (M2p, Cp) bf16."""
    four, m2p, kp = cols.shape
    cp = w2.shape[1]
    grid = (m2p // tm,)
    return pl.pallas_call(
        _conv_elu_pool_kernel,
        out_shape=jax.ShapeDtypeStruct((m2p, cp), jnp.bfloat16),
        grid=grid,
        in_specs=[
            pl.BlockSpec((four, tm, kp), lambda i: (0, i, 0)),
            pl.BlockSpec((kp, cp), lambda i: (0, 0)),
            pl.BlockSpec((1, cp), lambda i: (0, 0)),
        ],
        out_specs=pl.BlockSpec((tm, cp), lambda i: (i, 0)),
        compiler_params=pltpu.CompilerParams(
            dimension_semantics=("parallel",),      # shards over 2 TCs on v7x
            vmem_limit_bytes=32 * 1024 * 1024,      # portable budget (v6e could go higher)
        ),
    )(cols, w2, b2)


def conv_elu_pool_fc_softmax(cols, w2, b2, wfc, head_segments, *, tm):
    """Last conv layer fused with the FC heads + softmax.  Output (M2p, Dp) f32."""
    four, m2p, kp = cols.shape
    cp = w2.shape[1]
    dp = wfc.shape[1]
    kernel = functools.partial(_conv_elu_pool_fc_softmax_kernel,
                               head_segments=tuple(head_segments))
    grid = (m2p // tm,)
    return pl.pallas_call(
        kernel,
        out_shape=jax.ShapeDtypeStruct((m2p, dp), jnp.float32),
        grid=grid,
        in_specs=[
            pl.BlockSpec((four, tm, kp), lambda i: (0, i, 0)),
            pl.BlockSpec((kp, cp), lambda i: (0, 0)),
            pl.BlockSpec((1, cp), lambda i: (0, 0)),
            pl.BlockSpec((cp, dp), lambda i: (0, 0)),
        ],
        out_specs=pl.BlockSpec((tm, dp), lambda i: (i, 0)),
        compiler_params=pltpu.CompilerParams(
            dimension_semantics=("parallel",),
            vmem_limit_bytes=32 * 1024 * 1024,
        ),
    )(cols, w2, b2, wfc)


# ---------------------------------------------------------------------------
# Tile-size selection (byte budget + >=2 grid steps for v7x megacore)
# ---------------------------------------------------------------------------
def _tm_budget(kp, cp, budget_bytes=VMEM_BUDGET, tm_cap=TM_CAP):
    """Largest TM whose double-buffered block working set fits the budget."""
    # 2x bf16 cols (2*4*tm*kp*2B) + 2x bf16/f32 out (~2*tm*cp*4B)
    # + f32 matmul/epilogue temporaries (~6*tm*cp*4B) ; fixed: weights + bias.
    per_row = 16 * kp + 8 * cp + 24 * cp
    fixed = 2 * kp * cp + 4 * cp
    tm = (budget_bytes - fixed) // per_row
    return max(16, min(tm_cap, (tm // 16) * 16))


def _choose_tiles(m2, tm_max):
    """Return (tm_eff, n_tiles, m2p) with per-tile padding < 16 rows."""
    n_tiles = max(1, _cdiv(m2, tm_max))
    if m2 >= 32:
        n_tiles = max(n_tiles, 2)          # keep both v7x TensorCores busy
    tm_eff = _pad_to(max(1, _cdiv(m2, n_tiles)), 16)
    return tm_eff, n_tiles, tm_eff * n_tiles


# ---------------------------------------------------------------------------
# Glue (layout plumbing in plain JAX, fused into the same jit, all in bf16)
# ---------------------------------------------------------------------------
def _im2col_pool_windows(x):
    """x: (N, H, W, C) -> (4, N*(H//2)*(W//2), 9*C); leading axis = 2x2 window pos."""
    N, H, W, C = x.shape
    xp = jnp.pad(x, ((0, 0), (1, 1), (1, 1), (0, 0)))
    patches = [xp[:, kh:kh + H, kw:kw + W, :] for kh in range(3) for kw in range(3)]
    cols = jnp.concatenate(patches, axis=-1)              # (N, H, W, 9C)
    Ho, Wo = H // 2, W // 2
    cols = cols.reshape(N, Ho, 2, Wo, 2, 9 * C)
    cols = cols.transpose(2, 4, 0, 1, 3, 5)               # (2, 2, N, Ho, Wo, 9C)
    return cols.reshape(4, N * Ho * Wo, 9 * C)


def conv_layer_meta(input_channels, start_channels, start_dim, channel_mult):
    """(cin, cout, has_bias) per conv layer + final channels (mirrors SimpleNet.__init__)."""
    metas = []
    current_dim = start_dim
    current_channels = start_channels
    while current_dim > 1:
        if current_dim == start_dim:
            metas.append((input_channels, current_channels, True))
        else:
            cout = int(current_channels * channel_mult)
            metas.append((current_channels, cout, not (current_dim < 8)))
            current_channels = cout
        current_dim //= 2
    return metas, current_channels


def make_forward(input_channels, start_channels, start_dim, channel_mult, output_dims):
    metas, c_final = conv_layer_meta(input_channels, start_channels, start_dim, channel_mult)
    n_layers = len(metas)
    head_dims = tuple(int(d) for d in output_dims)
    head_offs = tuple(int(sum(head_dims[:i])) for i in range(len(head_dims)))
    head_segments = tuple(zip(head_offs, head_dims))

    @jax.jit
    def forward(x_nchw, conv_ws, conv_bs, fc_wcat):
        # x.float() in torch, then bf16 for the MXU path (cast BEFORE im2col so the
        # 9x-expanded cols tensor is never materialized in f32).
        x = jnp.transpose(x_nchw.astype(jnp.float32), (0, 2, 3, 1)).astype(jnp.bfloat16)
        n = x.shape[0]
        for li, ((_cin, cout, _bias), w2, b2) in enumerate(zip(metas, conv_ws, conv_bs)):
            _, h, w, _ = x.shape
            ho, wo = h // 2, w // 2
            cols = _im2col_pool_windows(x)                 # (4, M2, 9*Cin) bf16
            m2, k = cols.shape[1], cols.shape[2]
            kp, cp = w2.shape
            tm_eff, _n_tiles, m2p = _choose_tiles(m2, _tm_budget(kp, cp))
            cols = jnp.pad(cols, ((0, 0), (0, m2p - m2), (0, kp - k)))
            if li == n_layers - 1:
                # Conv stack must reduce spatial dims to 1x1 (same assumption as
                # SimpleNet.forward's x.view(-1, C_final)); checked at trace time.
                assert ho == 1 and wo == 1, (ho, wo)
                # Last layer: rows of the pooled output ARE the per-sample feature
                # vectors -> fuse the merged FC heads + per-head softmax here.
                probs = conv_elu_pool_fc_softmax(cols, w2, b2, fc_wcat,
                                                 head_segments, tm=tm_eff)   # (M2p, Dp)
                return [probs[:n, off:off + d] for off, d in head_segments]
            y = conv_elu_pool(cols, w2, b2, tm=tm_eff)     # (M2p, Cp) bf16
            x = y[:m2, :cout].reshape(n, ho, wo, cout)
        raise AssertionError("conv stack must contain at least one layer")

    return forward


# ---------------------------------------------------------------------------
# Deterministic parameter construction (mirrors SimpleNet.__init__ shapes)
# ---------------------------------------------------------------------------
def init_params(key, input_channels, start_channels, start_dim, channel_mult, output_dims):
    """Returns (kernel-layout padded params, raw torch-layout params for the reference)."""
    metas, c_final = conv_layer_meta(input_channels, start_channels, start_dim, channel_mult)
    conv_ws, conv_bs, raw_convs = [], [], []
    for cin, cout, has_bias in metas:
        key, kw, kb = jax.random.split(key, 3)
        bound = 1.0 / ((cin * 9) ** 0.5)
        w = jax.random.uniform(kw, (cout, cin, 3, 3), jnp.float32, -bound, bound)
        b = jax.random.uniform(kb, (cout,), jnp.float32, -bound, bound) if has_bias else None
        raw_convs.append((w, b))
        # (Cout,Cin,kh,kw) -> (kh,kw,Cin,Cout) -> (9*Cin, Cout) matmul layout,
        # zero-padded so both K and Cout are lane-dense multiples of 128.
        w2 = jnp.transpose(w, (2, 3, 1, 0)).reshape(9 * cin, cout)
        kp, cp = _pad_to(9 * cin, LANE), _pad_to(cout, LANE)
        conv_ws.append(jnp.pad(w2, ((0, kp - 9 * cin), (0, cp - cout))).astype(jnp.bfloat16))
        bvec = b if b is not None else jnp.zeros((cout,), jnp.float32)
        conv_bs.append(jnp.pad(bvec, (0, cp - cout)).reshape(1, cp))
    raw_fcs, blocks = [], []
    for d in output_dims:
        key, kf = jax.random.split(key)
        bound = 1.0 / (c_final ** 0.5)
        wf = jax.random.uniform(kf, (d, c_final), jnp.float32, -bound, bound)
        raw_fcs.append(wf)
        blocks.append(wf.T)                                 # (C_final, d)
    wcat = jnp.concatenate(blocks, axis=1)                  # heads merged on the lane dim
    cfp, dp = _pad_to(c_final, LANE), _pad_to(sum(output_dims), LANE)
    fc_wcat = jnp.pad(wcat, ((0, cfp - c_final), (0, dp - wcat.shape[1]))).astype(jnp.bfloat16)
    return (conv_ws, conv_bs, fc_wcat), (raw_convs, raw_fcs)


# ---------------------------------------------------------------------------
# Pure-JAX f32 reference (mirrors SimpleNet.forward) for a correctness check
# ---------------------------------------------------------------------------
def reference_forward(x_nchw, raw_convs, raw_fcs):
    x = x_nchw.astype(jnp.float32)
    for w, b in raw_convs:
        x = jax.lax.conv_general_dilated(
            x, w, window_strides=(1, 1), padding=((1, 1), (1, 1)),
            dimension_numbers=("NCHW", "OIHW", "NCHW"))
        if b is not None:
            x = x + b[None, :, None, None]
        x = jnp.where(x > 0, x, jnp.exp(jnp.minimum(x, 0.0)) - 1.0)       # ELU
        n, c, h, wd = x.shape
        x = x.reshape(n, c, h // 2, 2, wd // 2, 2).max(axis=(3, 5))       # maxpool 2x2
    feats = x.reshape(x.shape[0], -1)
    return [jax.nn.softmax(feats @ wf.T, axis=1) for wf in raw_fcs]


# ---------------------------------------------------------------------------
if __name__ == "__main__":
    # Small config consistent with the module:
    # input_channels=3, start_channels=4, start_dim=16, channel_mult=2, output_dims=[2, 3]
    N, C_IN, START_CH, START_DIM, MULT = 2, 3, 4, 16, 2
    OUTPUT_DIMS = [2, 3]

    key = jax.random.PRNGKey(0)
    k_in, k_param = jax.random.split(key)
    x = jax.random.normal(k_in, (N, C_IN, START_DIM, START_DIM), jnp.float32)

    (conv_ws, conv_bs, fc_wcat), (raw_convs, raw_fcs) = init_params(
        k_param, C_IN, START_CH, START_DIM, MULT, OUTPUT_DIMS)

    forward = make_forward(C_IN, START_CH, START_DIM, MULT, OUTPUT_DIMS)
    outs = forward(x, conv_ws, conv_bs, fc_wcat)
    outs = jax.block_until_ready(outs)

    refs = reference_forward(x, raw_convs, raw_fcs)
    for out, ref, d in zip(outs, refs, OUTPUT_DIMS):
        assert out.shape == (N, d), out.shape
        # exact (non-approx) softmax normalization -> tight sum-to-1 invariant.
        assert jnp.allclose(jnp.sum(out, axis=1), 1.0, atol=1e-3), jnp.sum(out, axis=1)
        # bf16 MXU inputs + bf16 inter-layer activations -> loose abs tolerance vs f32 ref.
        assert jnp.allclose(out, ref, atol=5e-2), (out, ref)

    print("KERNEL_OK")
</pallas_src>

<mosaic_0001>
module attributes {stable_mosaic.version = 11 : i64} {
  func.func @_conv_elu_pool_kernel(%arg0: i32, %arg1: memref<4x64x128xbf16, #tpu.memory_space<vmem>>, %arg2: memref<128x128xbf16, #tpu.memory_space<vmem>>, %arg3: memref<1x128xf32, #tpu.memory_space<vmem>>, %arg4: memref<64x128xbf16, #tpu.memory_space<vmem>>) attributes {dimension_semantics = [#tpu.dimension_semantics<parallel>], iteration_bounds = array<i64: 2>, scalar_prefetch = 0 : i64, scratch_operands = 0 : i64, tpu.core_type = #tpu.core_type<tc>, window_params = [{transform_indices = @transform_0, window_bounds = array<i64: 4, 64, 128>}, {pipeline_mode = #tpu.pipeline_mode<synchronous>, transform_indices = @transform_1, window_bounds = array<i64: 128, 128>}, {pipeline_mode = #tpu.pipeline_mode<synchronous>, transform_indices = @transform_2, window_bounds = array<i64: 1, 128>}, {transform_indices = @transform_3, window_bounds = array<i64: 64, 128>}]} {
    %c0 = arith.constant 0 : index
    %c0_0 = arith.constant 0 : index
    %c0_1 = arith.constant 0 : index
    %0 = vector.load %arg1[%c0, %c0_0, %c0_1] : memref<4x64x128xbf16, #tpu.memory_space<vmem>>, vector<4x64x128xbf16>
    %1 = vector.shape_cast %0 : vector<4x64x128xbf16> to vector<256x128xbf16>
    %c0_2 = arith.constant 0 : index
    %c0_3 = arith.constant 0 : index
    %2 = vector.load %arg2[%c0_2, %c0_3] : memref<128x128xbf16, #tpu.memory_space<vmem>>, vector<128x128xbf16>
    %cst = arith.constant dense<0.000000e+00> : vector<256x128xf32>
    %3 = tpu.matmul %1, %2, %cst {dimension_numbers = #tpu.dot_dimension_numbers<[1], [0], [0], [1], [0, 0, 1, 1], [], []>} : vector<256x128xbf16>, vector<128x128xbf16>, vector<256x128xf32> -> vector<256x128xf32>
    %4 = vector.shape_cast %3 : vector<256x128xf32> to vector<4x64x128xf32>
    %5 = vector.extract_strided_slice %4 {offsets = [0, 0, 0], sizes = [1, 64, 128], strides = [1, 1, 1]} : vector<4x64x128xf32> to vector<1x64x128xf32>
    %6 = vector.shape_cast %5 : vector<1x64x128xf32> to vector<64x128xf32>
    %7 = vector.extract_strided_slice %4 {offsets = [1, 0, 0], sizes = [1, 64, 128], strides = [1, 1, 1]} : vector<4x64x128xf32> to vector<1x64x128xf32>
    %8 = vector.shape_cast %7 : vector<1x64x128xf32> to vector<64x128xf32>
    %9 = arith.maximumf %6, %8 : vector<64x128xf32>
    %10 = vector.extract_strided_slice %4 {offsets = [2, 0, 0], sizes = [1, 64, 128], strides = [1, 1, 1]} : vector<4x64x128xf32> to vector<1x64x128xf32>
    %11 = vector.shape_cast %10 : vector<1x64x128xf32> to vector<64x128xf32>
    %12 = vector.extract_strided_slice %4 {offsets = [3, 0, 0], sizes = [1, 64, 128], strides = [1, 1, 1]} : vector<4x64x128xf32> to vector<1x64x128xf32>
    %13 = vector.shape_cast %12 : vector<1x64x128xf32> to vector<64x128xf32>
    %14 = arith.maximumf %11, %13 : vector<64x128xf32>
    %15 = arith.maximumf %9, %14 : vector<64x128xf32>
    %c0_4 = arith.constant 0 : index
    %c0_5 = arith.constant 0 : index
    %16 = vector.load %arg3[%c0_4, %c0_5] : memref<1x128xf32, #tpu.memory_space<vmem>>, vector<1x128xf32>
    %17 = vector.broadcast %16 : vector<1x128xf32> to vector<64x128xf32>
    %18 = arith.addf %15, %17 : vector<64x128xf32>
    %cst_6 = arith.constant 0.000000e+00 : f32
    %19 = vector.broadcast %cst_6 : f32 to vector<64x128xf32>
    %20 = arith.cmpf ogt, %18, %19 : vector<64x128xf32>
    %cst_7 = arith.constant 0.000000e+00 : f32
    %21 = vector.broadcast %cst_7 : f32 to vector<64x128xf32>
    %22 = arith.minimumf %18, %21 : vector<64x128xf32>
    %23 = math.exp %22 : vector<64x128xf32>
    %cst_8 = arith.constant 1.000000e+00 : f32
    %24 = vector.broadcast %cst_8 : f32 to vector<64x128xf32>
    %25 = arith.subf %23, %24 : vector<64x128xf32>
    %26 = arith.select %20, %18, %25 : vector<64x128xi1>, vector<64x128xf32>
    %27 = arith.truncf %26 : vector<64x128xf32> to vector<64x128xbf16>
    %c0_9 = arith.constant 0 : index
    %c0_10 = arith.constant 0 : index
    %28 = vector.load %arg4[%c0_9, %c0_10] : memref<64x128xbf16, #tpu.memory_space<vmem>>, vector<64x128xbf16>
    tpu.vector_store %arg4[%c0_9, %c0_10], %27 {strides = array<i32>} : memref<64x128xbf16, #tpu.memory_space<vmem>>, vector<64x128xbf16>,
    return
  }
  func.func @transform_0(%arg0: i32) -> (i32, i32, i32) {
    %c0_i32 = arith.constant 0 : i32
    %c0_i32_0 = arith.constant 0 : i32
    %c0_i32_1 = arith.constant 0 : i32
    return %c0_i32, %arg0, %c0_i32_0 : i32, i32, i32
  }
  func.func @transform_1(%arg0: i32) -> (i32, i32) {
    %c0_i32 = arith.constant 0 : i32
    %c0_i32_0 = arith.constant 0 : i32
    %c0_i32_1 = arith.constant 0 : i32
    return %c0_i32, %c0_i32_0 : i32, i32
  }
  func.func @transform_2(%arg0: i32) -> (i32, i32) {
    %c0_i32 = arith.constant 0 : i32
    %c0_i32_0 = arith.constant 0 : i32
    %c0_i32_1 = arith.constant 0 : i32
    return %c0_i32, %c0_i32_0 : i32, i32
  }
  func.func @transform_3(%arg0: i32) -> (i32, i32) {
    %c0_i32 = arith.constant 0 : i32
    %c0_i32_0 = arith.constant 0 : i32
    return %arg0, %c0_i32 : i32, i32
  }
}

module attributes {stable_mosaic.version = 11 : i64} {
  func.func @_conv_elu_pool_kernel(%arg0: i32, %arg1: memref<4x16x128xbf16, #tpu.memory_space<vmem>>, %arg2: memref<128x128xbf16, #tpu.memory_space<vmem>>, %arg3: memref<1x128xf32, #tpu.memory_space<vmem>>, %arg4: memref<16x128xbf16, #tpu.memory_space<vmem>>) attributes {dimension_semantics = [#tpu.dimension_semantics<parallel>], iteration_bounds = array<i64: 2>, scalar_prefetch = 0 : i64, scratch_operands = 0 : i64, tpu.core_type = #tpu.core_type<tc>, window_params = [{transform_indices = @transform_0, window_bounds = array<i64: 4, 16, 128>}, {pipeline_mode = #tpu.pipeline_mode<synchronous>, transform_indices = @transform_1, window_bounds = array<i64: 128, 128>}, {pipeline_mode = #tpu.pipeline_mode<synchronous>, transform_indices = @transform_2, window_bounds = array<i64: 1, 128>}, {transform_indices = @transform_3, window_bounds = array<i64: 16, 128>}]} {
    %c0 = arith.constant 0 : index
    %c0_0 = arith.constant 0 : index
    %c0_1 = arith.constant 0 : index
    %0 = vector.load %arg1[%c0, %c0_0, %c0_1] : memref<4x16x128xbf16, #tpu.memory_space<vmem>>, vector<4x16x128xbf16>
    %1 = vector.shape_cast %0 : vector<4x16x128xbf16> to vector<64x128xbf16>
    %c0_2 = arith.constant 0 : index
    %c0_3 = arith.constant 0 : index
    %2 = vector.load %arg2[%c0_2, %c0_3] : memref<128x128xbf16, #tpu.memory_space<vmem>>, vector<128x128xbf16>
    %cst = arith.constant dense<0.000000e+00> : vector<64x128xf32>
    %3 = tpu.matmul %1, %2, %cst {dimension_numbers = #tpu.dot_dimension_numbers<[1], [0], [0], [1], [0, 0, 1, 1], [], []>} : vector<64x128xbf16>, vector<128x128xbf16>, vector<64x128xf32> -> vector<64x128xf32>
    %4 = vector.shape_cast %3 : vector<64x128xf32> to vector<4x16x128xf32>
    %5 = vector.extract_strided_slice %4 {offsets = [0, 0, 0], sizes = [1, 16, 128], strides = [1, 1, 1]} : vector<4x16x128xf32> to vector<1x16x128xf32>
    %6 = vector.shape_cast %5 : vector<1x16x128xf32> to vector<16x128xf32>
    %7 = vector.extract_strided_slice %4 {offsets = [1, 0, 0], sizes = [1, 16, 128], strides = [1, 1, 1]} : vector<4x16x128xf32> to vector<1x16x128xf32>
    %8 = vector.shape_cast %7 : vector<1x16x128xf32> to vector<16x128xf32>
    %9 = arith.maximumf %6, %8 : vector<16x128xf32>
    %10 = vector.extract_strided_slice %4 {offsets = [2, 0, 0], sizes = [1, 16, 128], strides = [1, 1, 1]} : vector<4x16x128xf32> to vector<1x16x128xf32>
    %11 = vector.shape_cast %10 : vector<1x16x128xf32> to vector<16x128xf32>
    %12 = vector.extract_strided_slice %4 {offsets = [3, 0, 0], sizes = [1, 16, 128], strides = [1, 1, 1]} : vector<4x16x128xf32> to vector<1x16x128xf32>
    %13 = vector.shape_cast %12 : vector<1x16x128xf32> to vector<16x128xf32>
    %14 = arith.maximumf %11, %13 : vector<16x128xf32>
    %15 = arith.maximumf %9, %14 : vector<16x128xf32>
    %c0_4 = arith.constant 0 : index
    %c0_5 = arith.constant 0 : index
    %16 = vector.load %arg3[%c0_4, %c0_5] : memref<1x128xf32, #tpu.memory_space<vmem>>, vector<1x128xf32>
    %17 = vector.broadcast %16 : vector<1x128xf32> to vector<16x128xf32>
    %18 = arith.addf %15, %17 : vector<16x128xf32>
    %cst_6 = arith.constant 0.000000e+00 : f32
    %19 = vector.broadcast %cst_6 : f32 to vector<16x128xf32>
    %20 = arith.cmpf ogt, %18, %19 : vector<16x128xf32>
    %cst_7 = arith.constant 0.000000e+00 : f32
    %21 = vector.broadcast %cst_7 : f32 to vector<16x128xf32>
    %22 = arith.minimumf %18, %21 : vector<16x128xf32>
    %23 = math.exp %22 : vector<16x128xf32>
    %cst_8 = arith.constant 1.000000e+00 : f32
    %24 = vector.broadcast %cst_8 : f32 to vector<16x128xf32>
    %25 = arith.subf %23, %24 : vector<16x128xf32>
    %26 = arith.select %20, %18, %25 : vector<16x128xi1>, vector<16x128xf32>
    %27 = arith.truncf %26 : vector<16x128xf32> to vector<16x128xbf16>
    %c0_9 = arith.constant 0 : index
    %c0_10 = arith.constant 0 : index
    %28 = vector.load %arg4[%c0_9, %c0_10] : memref<16x128xbf16, #tpu.memory_space<vmem>>, vector<16x128xbf16>
    tpu.vector_store %arg4[%c0_9, %c0_10], %27 {strides = array<i32>} : memref<16x128xbf16, #tpu.memory_space<vmem>>, vector<16x128xbf16>,
    return
  }
  func.func @transform_0(%arg0: i32) -> (i32, i32, i32) {
    %c0_i32 = arith.constant 0 : i32
    %c0_i32_0 = arith.constant 0 : i32
    %c0_i32_1 = arith.constant 0 : i32
    return %c0_i32, %arg0, %c0_i32_0 : i32, i32, i32
  }
  func.func @transform_1(%arg0: i32) -> (i32, i32) {
    %c0_i32 = arith.constant 0 : i32
    %c0_i32_0 = arith.constant 0 : i32
    %c0_i32_1 = arith.constant 0 : i32
    return %c0_i32, %c0_i32_0 : i32, i32
  }
  func.func @transform_2(%arg0: i32) -> (i32, i32) {
    %c0_i32 = arith.constant 0 : i32
    %c0_i32_0 = arith.constant 0 : i32
    %c0_i32_1 = arith.constant 0 : i32
    return %c0_i32, %c0_i32_0 : i32, i32
  }
  func.func @transform_3(%arg0: i32) -> (i32, i32) {
    %c0_i32 = arith.constant 0 : i32
    %c0_i32_0 = arith.constant 0 : i32
    return %arg0, %c0_i32 : i32, i32
  }
}

module attributes {stable_mosaic.version = 11 : i64} {
  func.func @_conv_elu_pool_kernel(%arg0: i32, %arg1: memref<4x16x128xbf16, #tpu.memory_space<vmem>>, %arg2: memref<128x128xbf16, #tpu.memory_space<vmem>>, %arg3: memref<1x128xf32, #tpu.memory_space<vmem>>, %arg4: memref<16x128xbf16, #tpu.memory_space<vmem>>) attributes {dimension_semantics = [#tpu.dimension_semantics<parallel>], iteration_bounds = array<i64: 1>, scalar_prefetch = 0 : i64, scratch_operands = 0 : i64, tpu.core_type = #tpu.core_type<tc>, window_params = [{transform_indices = @transform_0, window_bounds = array<i64: 4, 16, 128>}, {pipeline_mode = #tpu.pipeline_mode<synchronous>, transform_indices = @transform_1, window_bounds = array<i64: 128, 128>}, {pipeline_mode = #tpu.pipeline_mode<synchronous>, transform_indices = @transform_2, window_bounds = array<i64: 1, 128>}, {transform_indices = @transform_3, window_bounds = array<i64: 16, 128>}]} {
    %c0 = arith.constant 0 : index
    %c0_0 = arith.constant 0 : index
    %c0_1 = arith.constant 0 : index
    %0 = vector.load %arg1[%c0, %c0_0, %c0_1] : memref<4x16x128xbf16, #tpu.memory_space<vmem>>, vector<4x16x128xbf16>
    %1 = vector.shape_cast %0 : vector<4x16x128xbf16> to vector<64x128xbf16>
    %c0_2 = arith.constant 0 : index
    %c0_3 = arith.constant 0 : index
    %2 = vector.load %arg2[%c0_2, %c0_3] : memref<128x128xbf16, #tpu.memory_space<vmem>>, vector<128x128xbf16>
    %cst = arith.constant dense<0.000000e+00> : vector<64x128xf32>
    %3 = tpu.matmul %1, %2, %cst {dimension_numbers = #tpu.dot_dimension_numbers<[1], [0], [0], [1], [0, 0, 1, 1], [], []>} : vector<64x128xbf16>, vector<128x128xbf16>, vector<64x128xf32> -> vector<64x128xf32>
    %4 = vector.shape_cast %3 : vector<64x128xf32> to vector<4x16x128xf32>
    %5 = vector.extract_strided_slice %4 {offsets = [0, 0, 0], sizes = [1, 16, 128], strides = [1, 1, 1]} : vector<4x16x128xf32> to vector<1x16x128xf32>
    %6 = vector.shape_cast %5 : vector<1x16x128xf32> to vector<16x128xf32>
    %7 = vector.extract_strided_slice %4 {offsets = [1, 0, 0], sizes = [1, 16, 128], strides = [1, 1, 1]} : vector<4x16x128xf32> to vector<1x16x128xf32>
    %8 = vector.shape_cast %7 : vector<1x16x128xf32> to vector<16x128xf32>
    %9 = arith.maximumf %6, %8 : vector<16x128xf32>
    %10 = vector.extract_strided_slice %4 {offsets = [2, 0, 0], sizes = [1, 16, 128], strides = [1, 1, 1]} : vector<4x16x128xf32> to vector<1x16x128xf32>
    %11 = vector.shape_cast %10 : vector<1x16x128xf32> to vector<16x128xf32>
    %12 = vector.extract_strided_slice %4 {offsets = [3, 0, 0], sizes = [1, 16, 128], strides = [1, 1, 1]} : vector<4x16x128xf32> to vector<1x16x128xf32>
    %13 = vector.shape_cast %12 : vector<1x16x128xf32> to vector<16x128xf32>
    %14 = arith.maximumf %11, %13 : vector<16x128xf32>
    %15 = arith.maximumf %9, %14 : vector<16x128xf32>
    %c0_4 = arith.constant 0 : index
    %c0_5 = arith.constant 0 : index
    %16 = vector.load %arg3[%c0_4, %c0_5] : memref<1x128xf32, #tpu.memory_space<vmem>>, vector<1x128xf32>
    %17 = vector.broadcast %16 : vector<1x128xf32> to vector<16x128xf32>
    %18 = arith.addf %15, %17 : vector<16x128xf32>
    %cst_6 = arith.constant 0.000000e+00 : f32
    %19 = vector.broadcast %cst_6 : f32 to vector<16x128xf32>
    %20 = arith.cmpf ogt, %18, %19 : vector<16x128xf32>
    %cst_7 = arith.constant 0.000000e+00 : f32
    %21 = vector.broadcast %cst_7 : f32 to vector<16x128xf32>
    %22 = arith.minimumf %18, %21 : vector<16x128xf32>
    %23 = math.exp %22 : vector<16x128xf32>
    %cst_8 = arith.constant 1.000000e+00 : f32
    %24 = vector.broadcast %cst_8 : f32 to vector<16x128xf32>
    %25 = arith.subf %23, %24 : vector<16x128xf32>
    %26 = arith.select %20, %18, %25 : vector<16x128xi1>, vector<16x128xf32>
    %27 = arith.truncf %26 : vector<16x128xf32> to vector<16x128xbf16>
    %c0_9 = arith.constant 0 : index
    %c0_10 = arith.constant 0 : index
    %28 = vector.load %arg4[%c0_9, %c0_10] : memref<16x128xbf16, #tpu.memory_space<vmem>>, vector<16x128xbf16>
    tpu.vector_store %arg4[%c0_9, %c0_10], %27 {strides = array<i32>} : memref<16x128xbf16, #tpu.memory_space<vmem>>, vector<16x128xbf16>,
    return
  }
  func.func @transform_0(%arg0: i32) -> (i32, i32, i32) {
    %c0_i32 = arith.constant 0 : i32
    %c0_i32_0 = arith.constant 0 : i32
    %c0_i32_1 = arith.constant 0 : i32
    return %c0_i32, %arg0, %c0_i32_0 : i32, i32, i32
  }
  func.func @transform_1(%arg0: i32) -> (i32, i32) {
    %c0_i32 = arith.constant 0 : i32
    %c0_i32_0 = arith.constant 0 : i32
    %c0_i32_1 = arith.constant 0 : i32
    return %c0_i32, %c0_i32_0 : i32, i32
  }
  func.func @transform_2(%arg0: i32) -> (i32, i32) {
    %c0_i32 = arith.constant 0 : i32
    %c0_i32_0 = arith.constant 0 : i32
    %c0_i32_1 = arith.constant 0 : i32
    return %c0_i32, %c0_i32_0 : i32, i32
  }
  func.func @transform_3(%arg0: i32) -> (i32, i32) {
    %c0_i32 = arith.constant 0 : i32
    %c0_i32_0 = arith.constant 0 : i32
    return %arg0, %c0_i32 : i32, i32
  }
}

module attributes {stable_mosaic.version = 11 : i64} {
  func.func @_conv_elu_pool_fc_softmax_kernel(%arg0: i32, %arg1: memref<4x16x256xbf16, #tpu.memory_space<vmem>>, %arg2: memref<256x128xbf16, #tpu.memory_space<vmem>>, %arg3: memref<1x128xf32, #tpu.memory_space<vmem>>, %arg4: memref<128x128xbf16, #tpu.memory_space<vmem>>, %arg5: memref<16x128xf32, #tpu.memory_space<vmem>>) attributes {dimension_semantics = [#tpu.dimension_semantics<parallel>], iteration_bounds = array<i64: 1>, scalar_prefetch = 0 : i64, scratch_operands = 0 : i64, tpu.core_type = #tpu.core_type<tc>, window_params = [{transform_indices = @transform_0, window_bounds = array<i64: 4, 16, 256>}, {pipeline_mode = #tpu.pipeline_mode<synchronous>, transform_indices = @transform_1, window_bounds = array<i64: 256, 128>}, {pipeline_mode = #tpu.pipeline_mode<synchronous>, transform_indices = @transform_2, window_bounds = array<i64: 1, 128>}, {pipeline_mode = #tpu.pipeline_mode<synchronous>, transform_indices = @transform_3, window_bounds = array<i64: 128, 128>}, {transform_indices = @transform_4, window_bounds = array<i64: 16, 128>}]} {
    %c0 = arith.constant 0 : index
    %c0_0 = arith.constant 0 : index
    %c0_1 = arith.constant 0 : index
    %0 = vector.load %arg1[%c0, %c0_0, %c0_1] : memref<4x16x256xbf16, #tpu.memory_space<vmem>>, vector<4x16x256xbf16>
    %1 = vector.shape_cast %0 : vector<4x16x256xbf16> to vector<64x256xbf16>
    %c0_2 = arith.constant 0 : index
    %c0_3 = arith.constant 0 : index
    %2 = vector.load %arg2[%c0_2, %c0_3] : memref<256x128xbf16, #tpu.memory_space<vmem>>, vector<256x128xbf16>
    %cst = arith.constant dense<0.000000e+00> : vector<64x128xf32>
    %3 = tpu.matmul %1, %2, %cst {dimension_numbers = #tpu.dot_dimension_numbers<[1], [0], [0], [1], [0, 0, 1, 1], [], []>} : vector<64x256xbf16>, vector<256x128xbf16>, vector<64x128xf32> -> vector<64x128xf32>
    %4 = vector.shape_cast %3 : vector<64x128xf32> to vector<4x16x128xf32>
    %5 = vector.extract_strided_slice %4 {offsets = [0, 0, 0], sizes = [1, 16, 128], strides = [1, 1, 1]} : vector<4x16x128xf32> to vector<1x16x128xf32>
    %6 = vector.shape_cast %5 : vector<1x16x128xf32> to vector<16x128xf32>
    %7 = vector.extract_strided_slice %4 {offsets = [1, 0, 0], sizes = [1, 16, 128], strides = [1, 1, 1]} : vector<4x16x128xf32> to vector<1x16x128xf32>
    %8 = vector.shape_cast %7 : vector<1x16x128xf32> to vector<16x128xf32>
    %9 = arith.maximumf %6, %8 : vector<16x128xf32>
    %10 = vector.extract_strided_slice %4 {offsets = [2, 0, 0], sizes = [1, 16, 128], strides = [1, 1, 1]} : vector<4x16x128xf32> to vector<1x16x128xf32>
    %11 = vector.shape_cast %10 : vector<1x16x128xf32> to vector<16x128xf32>
    %12 = vector.extract_strided_slice %4 {offsets = [3, 0, 0], sizes = [1, 16, 128], strides = [1, 1, 1]} : vector<4x16x128xf32> to vector<1x16x128xf32>
    %13 = vector.shape_cast %12 : vector<1x16x128xf32> to vector<16x128xf32>
    %14 = arith.maximumf %11, %13 : vector<16x128xf32>
    %15 = arith.maximumf %9, %14 : vector<16x128xf32>
    %c0_4 = arith.constant 0 : index
    %c0_5 = arith.constant 0 : index
    %16 = vector.load %arg3[%c0_4, %c0_5] : memref<1x128xf32, #tpu.memory_space<vmem>>, vector<1x128xf32>
    %17 = vector.broadcast %16 : vector<1x128xf32> to vector<16x128xf32>
    %18 = arith.addf %15, %17 : vector<16x128xf32>
    %cst_6 = arith.constant 0.000000e+00 : f32
    %19 = vector.broadcast %cst_6 : f32 to vector<16x128xf32>
    %20 = arith.cmpf ogt, %18, %19 : vector<16x128xf32>
    %cst_7 = arith.constant 0.000000e+00 : f32
    %21 = vector.broadcast %cst_7 : f32 to vector<16x128xf32>
    %22 = arith.minimumf %18, %21 : vector<16x128xf32>
    %23 = math.exp %22 : vector<16x128xf32>
    %cst_8 = arith.constant 1.000000e+00 : f32
    %24 = vector.broadcast %cst_8 : f32 to vector<16x128xf32>
    %25 = arith.subf %23, %24 : vector<16x128xf32>
    %26 = arith.select %20, %18, %25 : vector<16x128xi1>, vector<16x128xf32>
    %27 = arith.truncf %26 : vector<16x128xf32> to vector<16x128xbf16>
    %c0_9 = arith.constant 0 : index
    %c0_10 = arith.constant 0 : index
    %28 = vector.load %arg4[%c0_9, %c0_10] : memref<128x128xbf16, #tpu.memory_space<vmem>>, vector<128x128xbf16>
    %cst_11 = arith.constant dense<0.000000e+00> : vector<16x128xf32>
    %29 = tpu.matmul %27, %28, %cst_11 {dimension_numbers = #tpu.dot_dimension_numbers<[1], [0], [0], [1], [0, 0, 1, 1], [], []>} : vector<16x128xbf16>, vector<128x128xbf16>, vector<16x128xf32> -> vector<16x128xf32>
    %30 = tpu.iota {dimensions = array<i32: 1>} : vector<16x128xi32>
    %cst_12 = arith.constant 0.000000e+00 : f32
    %31 = vector.broadcast %cst_12 : f32 to vector<16x128xf32>
    %c0_i32 = arith.constant 0 : i32
    %32 = vector.broadcast %c0_i32 : i32 to vector<16x128xi32>
    %33 = arith.cmpi sge, %30, %32 : vector<16x128xi32>
    %c2_i32 = arith.constant 2 : i32
    %34 = vector.broadcast %c2_i32 : i32 to vector<16x128xi32>
    %35 = arith.cmpi slt, %30, %34 : vector<16x128xi32>
    %36 = arith.andi %33, %35 : vector<16x128xi1>
    %cst_13 = arith.constant 0xFF800000 : f32
    %37 = vector.broadcast %cst_13 : f32 to vector<16x128xf32>
    %38 = arith.select %36, %29, %37 : vector<16x128xi1>, vector<16x128xf32>
    %cst_14 = arith.constant dense<0xFF800000> : vector<16xf32>
    %39 = vector.multi_reduction <maximumf>, %38, %cst_14 [1] : vector<16x128xf32> to vector<16xf32>
    %40 = vector.shape_cast %39 : vector<16xf32> to vector<16x1xf32>
    %41 = vector.broadcast %40 : vector<16x1xf32> to vector<16x128xf32>
    %42 = arith.subf %38, %41 : vector<16x128xf32>
    %43 = math.exp %42 : vector<16x128xf32>
    %cst_15 = arith.constant dense<0.000000e+00> : vector<16xf32>
    %44 = vector.multi_reduction <add>, %43, %cst_15 [1] : vector<16x128xf32> to vector<16xf32>
    %45 = vector.shape_cast %44 : vector<16xf32> to vector<16x1xf32>
    %46 = vector.broadcast %45 : vector<16x1xf32> to vector<16x128xf32>
    %47 = arith.divf %43, %46 : vector<16x128xf32>
    %48 = arith.addf %31, %47 : vector<16x128xf32>
    %c2_i32_16 = arith.constant 2 : i32
    %49 = vector.broadcast %c2_i32_16 : i32 to vector<16x128xi32>
    %50 = arith.cmpi sge, %30, %49 : vector<16x128xi32>
    %c5_i32 = arith.constant 5 : i32
    %51 = vector.broadcast %c5_i32 : i32 to vector<16x128xi32>
    %52 = arith.cmpi slt, %30, %51 : vector<16x128xi32>
    %53 = arith.andi %50, %52 : vector<16x128xi1>
    %cst_17 = arith.constant 0xFF800000 : f32
    %54 = vector.broadcast %cst_17 : f32 to vector<16x128xf32>
    %55 = arith.select %53, %29, %54 : vector<16x128xi1>, vector<16x128xf32>
    %cst_18 = arith.constant dense<0xFF800000> : vector<16xf32>
    %56 = vector.multi_reduction <maximumf>, %55, %cst_18 [1] : vector<16x128xf32> to vector<16xf32>
    %57 = vector.shape_cast %56 : vector<16xf32> to vector<16x1xf32>
    %58 = vector.broadcast %57 : vector<16x1xf32> to vector<16x128xf32>
    %59 = arith.subf %55, %58 : vector<16x128xf32>
    %60 = math.exp %59 : vector<16x128xf32>
    %cst_19 = arith.constant dense<0.000000e+00> : vector<16xf32>
    %61 = vector.multi_reduction <add>, %60, %cst_19 [1] : vector<16x128xf32> to vector<16xf32>
    %62 = vector.shape_cast %61 : vector<16xf32> to vector<16x1xf32>
    %63 = vector.broadcast %62 : vector<16x1xf32> to vector<16x128xf32>
    %64 = arith.divf %60, %63 : vector<16x128xf32>
    %65 = arith.addf %48, %64 : vector<16x128xf32>
    %c0_20 = arith.constant 0 : index
    %c0_21 = arith.constant 0 : index
    %66 = vector.load %arg5[%c0_20, %c0_21] : memref<16x128xf32, #tpu.memory_space<vmem>>, vector<16x128xf32>
    tpu.vector_store %arg5[%c0_20, %c0_21], %65 {strides = array<i32>} : memref<16x128xf32, #tpu.memory_space<vmem>>, vector<16x128xf32>,
    return
  }
  func.func @transform_0(%arg0: i32) -> (i32, i32, i32) {
    %c0_i32 = arith.constant 0 : i32
    %c0_i32_0 = arith.constant 0 : i32
    %c0_i32_1 = arith.constant 0 : i32
    return %c0_i32, %arg0, %c0_i32_0 : i32, i32, i32
  }
  func.func @transform_1(%arg0: i32) -> (i32, i32) {
    %c0_i32 = arith.constant 0 : i32
    %c0_i32_0 = arith.constant 0 : i32
    %c0_i32_1 = arith.constant 0 : i32
    return %c0_i32, %c0_i32_0 : i32, i32
  }
  func.func @transform_2(%arg0: i32) -> (i32, i32) {
    %c0_i32 = arith.constant 0 : i32
    %c0_i32_0 = arith.constant 0 : i32
    %c0_i32_1 = arith.constant 0 : i32
    return %c0_i32, %c0_i32_0 : i32, i32
  }
  func.func @transform_3(%arg0: i32) -> (i32, i32) {
    %c0_i32 = arith.constant 0 : i32
    %c0_i32_0 = arith.constant 0 : i32
    %c0_i32_1 = arith.constant 0 : i32
    return %c0_i32, %c0_i32_0 : i32, i32
  }
  func.func @transform_4(%arg0: i32) -> (i32, i32) {
    %c0_i32 = arith.constant 0 : i32
    %c0_i32_0 = arith.constant 0 : i32
    return %arg0, %c0_i32 : i32, i32
  }
}

</mosaic_0001>

<bundles_post_ra>
// kernel: forward.4
= control target key start
LH: loop header
LB: loop body
LE: loop exit
PB: predicated region body
PF: predicated region fallthrough
CT: control target
= control target key end

     0   :  { %s1164_s12 = smov 0   ;;  %s1166_s13 = smov 0   ;;  %s1311_s0 = inlined_call_operand.vmem [shape: bf16[4,128,128], index: 0, kind: input, shape index: {}]   ;;  %s1312_s1 = inlined_call_operand.vmem [shape: bf16[128,128], index: 1, kind: input, shape index: {}]   ;;  %s1313_s2 = inlined_call_operand.vmem [shape: f32[1,128], index: 2, kind: input, shape index: {}]   ;;  %s1314_s3 = inlined_call_operand.vmem [shape: bf16[128,128], index: 3, kind: output, shape index: {}]  }
   0x1   :  { %s1168_s14 = smov 0  }
   0x2 LB: > { %s882_s15 = sadd.s32 4294967295, %s1142_s14   ;;  %s1181_s16 = sadd.s32 1, %s1142_s14   ;;  %s1142_s14 = sphi %s1168_s14, %s1317_s14   ;;  %s1138_s13 = sphi %s1166_s13, %s1316_s13   ;;  %s1134_s12 = sphi %s1164_s12, %s1315_s12  }
   0x3   : > { %s17_s17 = ssub.s32 %s1142_s14, %s1181_s16  ;;  %s20_s18 = sadd.s32 1, %s1138_s13 }
   0x4   : > { %p18_p0 = scmp.eq.s32.totalorder %s17_s17, 0  ;;  %p27_p1 = scmp.ne.s32.totalorder %s1138_s13, %s1134_s12 }
   0x5   : > { %p28_p2 = scmp.eq.s32.totalorder %s1142_s14, 0  ;;  %p885_p4 = scmp.ge.s32.totalorder %s1142_s14, 2 }
   0x6   : > { %s1190_s19 = scalar_select %p18_p0, %s1138_s13, %s20_s18  }
   0x7   : > { %p29_p3 = por %p28_p2, %p27_p1  ;;  %127 = sbr.rel (%p885_p4) target bundleno = 26 (0x1a), region = 24 }
   0xe   : > { %130 = sbr.rel (!%p29_p3) target bundleno = 26 (0x1a), region = 28  ;;  %s132_s20 = sand.u32 (%p29_p3), 1, %s1138_s13  }
   0xf   : > { %s936_s21 = sshll.u32 (%p29_p3), %s1142_s14, 5  ;;  %s886_s22 = sshll.u32 (%p29_p3), %s132_s20, 7 }
  0x10   : > { %s1198_s25 = scalar_lea.vmem (%p29_p3), %s1311_s0, %s936_s21  ;;  %s134_s26 = scalar_lea.vmem (%p29_p3), [#allocation2], %s886_s22 }
  0x11   : > { %v153_v0 = vld [vmem:[%s1198_s25] sm:$0xff] (%p29_p3)   ;;  %v157_v1 = vld [vmem:[%s1198_s25 + $0x8] sm:$0xff] (%p29_p3)   ;;  %v161_v2 = vld [vmem:[%s1198_s25 + $0x10] sm:$0xff] (%p29_p3)  }
  0x12   : > { %154 = vst [vmem:[%s134_s26] sm:$0xff] (%p29_p3), %v153_v0   ;;  %158 = vst [vmem:[%s134_s26 + $0x8] sm:$0xff] (%p29_p3), %v157_v1   ;;  %v165_v3 = vld [vmem:[%s1198_s25 + $0x18] sm:$0xff] (%p29_p3)   ;;  %v169_v4 = vld [vmem:[%s1198_s25 + $0x40] sm:$0xff] (%p29_p3)  }
  0x13   : > { %162 = vst [vmem:[%s134_s26 + $0x10] sm:$0xff] (%p29_p3), %v161_v2   ;;  %v173_v5 = vld [vmem:[%s1198_s25 + $0x48] sm:$0xff] (%p29_p3)   ;;  %166 = vst [vmem:[%s134_s26 + $0x18] sm:$0xff] (%p29_p3), %v165_v3   ;;  %v177_v6 = vld [vmem:[%s1198_s25 + $0x50] sm:$0xff] (%p29_p3)  }
  0x14   : > { %170 = vst [vmem:[%s134_s26 + $0x20] sm:$0xff] (%p29_p3), %v169_v4   ;;  %174 = vst [vmem:[%s134_s26 + $0x28] sm:$0xff] (%p29_p3), %v173_v5   ;;  %v181_v7 = vld [vmem:[%s1198_s25 + $0x58] sm:$0xff] (%p29_p3)   ;;  %v185_v8 = vld [vmem:[%s1198_s25 + $0x80] sm:$0xff] (%p29_p3)  }
  0x15   : > { %178 = vst [vmem:[%s134_s26 + $0x30] sm:$0xff] %v177_v6   ;;  %182 = vst [vmem:[%s134_s26 + $0x38] sm:$0xff] %v181_v7   ;;  %v189_v9 = vld [vmem:[%s1198_s25 + $0x88] sm:$0xff]   ;;  %v193_v10 = vld [vmem:[%s1198_s25 + $0x90] sm:$0xff]  }
  0x16   : > { %186 = vst [vmem:[%s134_s26 + $0x40] sm:$0xff] %v185_v8   ;;  %v197_v11 = vld [vmem:[%s1198_s25 + $0x98] sm:$0xff]   ;;  %190 = vst [vmem:[%s134_s26 + $0x48] sm:$0xff] %v189_v9   ;;  %v201_v12 = vld [vmem:[%s1198_s25 + $0xc0] sm:$0xff]  }
  0x17   : > { %194 = vst [vmem:[%s134_s26 + $0x50] sm:$0xff] %v193_v10   ;;  %198 = vst [vmem:[%s134_s26 + $0x58] sm:$0xff] %v197_v11   ;;  %v205_v13 = vld [vmem:[%s1198_s25 + $0xc8] sm:$0xff]   ;;  %v209_v14 = vld [vmem:[%s1198_s25 + $0xd0] sm:$0xff]  }
  0x18   : > { %202 = vst [vmem:[%s134_s26 + $0x60] sm:$0xff] %v201_v12   ;;  %206 = vst [vmem:[%s134_s26 + $0x68] sm:$0xff] %v205_v13   ;;  %v213_v15 = vld [vmem:[%s1198_s25 + $0xd8] sm:$0xff]  }
  0x19   : > { %210 = vst [vmem:[%s134_s26 + $0x70] sm:$0xff] %v209_v14   ;;  %214 = vst [vmem:[%s134_s26 + $0x78] sm:$0xff] %v213_v15  }
  0x1a PF: > { %p889_p5 = scmp.ge.s32.totalorder %s1142_s14, 1  ;;  %p302_p6 = scmp.lt.s32.totalorder %s1142_s14, 3 }
  0x1c   : > { %p303_p7 = pnand %p889_p5, %p302_p6 }
  0x1d   : > { %v1080_v16 = vld [vmem:[%s1312_s1] sm:$0xff] (!%p303_p7)   ;;  %s309_s29 = sand.u32 (!%p303_p7), 1, %s1134_s12   ;;  %v1081_v17 = vld [vmem:[%s1312_s1 + $0x8] sm:$0xff] (!%p303_p7)   ;;  %v1082_v18 = vld [vmem:[%s1312_s1 + $0x10] sm:$0xff] (!%p303_p7)   ;;  %s891_s26 = sshll.u32 (!%p303_p7), %s882_s15, 3 }
  0x1e   : > { %306 = sbr.rel (%p303_p7) target bundleno = 329 (0x149), region = 69  ;;  %992 = vmatprep.subr.bf16.mxu0 (!%p303_p7), %v1080_v16  ;;  %1040 = vmatprep.subr.bf16.mxu1 (!%p303_p7), %v1080_v16  ;;  %s890_s5 = sshll.u32 (!%p303_p7), %s309_s29, 7  ;;  %v1083_v19 = vld [vmem:[%s1312_s1 + $0x18] sm:$0xff] (!%p303_p7)   ;;  %v1084_v22 = vld [vmem:[%s1312_s1 + $0x20] sm:$0xff] (!%p303_p7)   ;;  %v1085_v23 = vld [vmem:[%s1312_s1 + $0x28] sm:$0xff] (!%p303_p7)  }
  0x1f   : > { %993 = vmatpush3.bf16.msra.mxu0 (!%p303_p7), %v1080_v16  ;;  %1048 = vmatpush3.bf16.msra.mxu1 (!%p303_p7), %v1080_v16  ;;  %s1231_s10 = scalar_lea.vmem (!%p303_p7), [#allocation2], %s890_s5  ;;  %v1086_v24 = vld [vmem:[%s1312_s1 + $0x30] sm:$0xff] (!%p303_p7)   ;;  %v1087_v25 = vld [vmem:[%s1312_s1 + $0x38] sm:$0xff] (!%p303_p7)   ;;  %v917_v62 = vld [vmem:[%s1313_s2] ss:$0 sm:$0xff] (!%p303_p7)  ;;  %p334_p8 = scmp.lt.s32.totalorder (!%p303_p7), %s891_s26, 15 }
  0x20   : > { %994 = vmatprep.subr.bf16.mxu0 (!%p303_p7), %v1081_v17  ;;  %1041 = vmatprep.subr.bf16.mxu1 (!%p303_p7), %v1081_v17  ;;  %v1088_v20 = vld [vmem:[%s1231_s10] sm:$0xff] (!%p303_p7)   ;;  %v1090_v26 = vld [vmem:[%s1231_s10 + $0x8] sm:$0xff] (!%p303_p7)   ;;  %v1092_v28 = vld [vmem:[%s1231_s10 + $0x10] sm:$0xff] (!%p303_p7)  }
  0x21   : > { %v1089_v21 = vld [vmem:[%s1231_s10 + $0x40] sm:$0xff] (!%p303_p7)   ;;  %1008 = vmatprep.mubr.bf16.mxu0 (!%p303_p7), %v1088_v20  ;;  %v1091_v27 = vld [vmem:[%s1231_s10 + $0x48] sm:$0xff] (!%p303_p7)   ;;  %v1093_v29 = vld [vmem:[%s1231_s10 + $0x50] sm:$0xff] (!%p303_p7)  }
  0x22   : > { %1024 = vmatprep.mubr.bf16.mxu1 (!%p303_p7), %v1089_v21  ;;  %v1094_v30 = vld [vmem:[%s1231_s10 + $0x18] sm:$0xff] (!%p303_p7)   ;;  %v1096_v32 = vld [vmem:[%s1231_s10 + $0x20] sm:$0xff] (!%p303_p7)   ;;  %v1098_v34 = vld [vmem:[%s1231_s10 + $0x28] sm:$0xff] (!%p303_p7)  }
  0x23   : > { %995 = vmatpush3.bf16.msra.mxu0 (!%p303_p7), %v1081_v17  ;;  %1049 = vmatpush3.bf16.msra.mxu1 (!%p303_p7), %v1081_v17  ;;  %v1095_v31 = vld [vmem:[%s1231_s10 + $0x58] sm:$0xff] (!%p303_p7)   ;;  %v1097_v33 = vld [vmem:[%s1231_s10 + $0x60] sm:$0xff] (!%p303_p7)   ;;  %v1099_v35 = vld [vmem:[%s1231_s10 + $0x68] sm:$0xff] (!%p303_p7)  }
  0x24   : > { %996 = vmatprep.subr.bf16.mxu0 (!%p303_p7), %v1082_v18  ;;  %1042 = vmatprep.subr.bf16.mxu1 (!%p303_p7), %v1082_v18  ;;  %v1100_v36 = vld [vmem:[%s1231_s10 + $0x30] sm:$0xff] (!%p303_p7)   ;;  %v1102_v38 = vld [vmem:[%s1231_s10 + $0x38] sm:$0xff] (!%p303_p7)  }
  0x25   : > { %v1101_v37 = vld [vmem:[%s1231_s10 + $0x70] sm:$0xff]   ;;  %v1103_v39 = vld [vmem:[%s1231_s10 + $0x78] sm:$0xff]   ;;  %s1319_s26 = smov (!%p334_p8, %s891_s26), 15 }
  0x26   : > { %s892_s14 = sshll.u32 %s1319_s26, 2 }
  0x27   : > { %997 = vmatpush3.bf16.msra.mxu0 %v1082_v18  ;;  %1050 = vmatpush3.bf16.msra.mxu1 %v1082_v18  ;;  %s337_s28 = scalar_lea.vmem %s1314_s3, %s892_s14 }
  0x28   : > { %998 = vmatprep.subr.bf16.mxu0 %v1083_v19  ;;  %1043 = vmatprep.subr.bf16.mxu1 %v1083_v19 }
  0x2b   : > { %999 = vmatpush3.bf16.msra.mxu0 %v1083_v19  ;;  %1051 = vmatpush3.bf16.msra.mxu1 %v1083_v19 }
  0x2c   : > { %1000 = vmatprep.subr.bf16.mxu0 %v1084_v22  ;;  %1044 = vmatprep.subr.bf16.mxu1 %v1084_v22 }
  0x2f   : > { %1001 = vmatpush3.bf16.msra.mxu0 %v1084_v22  ;;  %1052 = vmatpush3.bf16.msra.mxu1 %v1084_v22 }
  0x30   : > { %1002 = vmatprep.subr.bf16.mxu0 %v1085_v23  ;;  %1045 = vmatprep.subr.bf16.mxu1 %v1085_v23 }
  0x33   : > { %1003 = vmatpush3.bf16.msra.mxu0 %v1085_v23  ;;  %1053 = vmatpush3.bf16.msra.mxu1 %v1085_v23 }
  0x34   : > { %1004 = vmatprep.subr.bf16.mxu0 %v1086_v24  ;;  %1046 = vmatprep.subr.bf16.mxu1 %v1086_v24 }
  0x37   : > { %1005 = vmatpush3.bf16.msra.mxu0 %v1086_v24  ;;  %1054 = vmatpush3.bf16.msra.mxu1 %v1086_v24 }
  0x38   : > { %1006 = vmatprep.subr.bf16.mxu0 %v1087_v25  ;;  %1047 = vmatprep.subr.bf16.mxu1 %v1087_v25 }
  0x3b   : > { %1007 = vmatpush3.bf16.msra.mxu0 %v1087_v25  ;;  %1055 = vmatpush3.bf16.msra.mxu1 %v1087_v25 }
  0x3e   : > { %1009 = vmatmul.mubr.bf16.vlgmr.msra.gmra.mrb[0].mxu0 %v1090_v26  ;;  %1025 = vmatmul.mubr.bf16.vlgmr.msra.gmra.mrb[0].mxu1 %v1091_v27 }
  0x3f   : > { %1012 = vmatprep.mubr.bf16.mxu0 %v1092_v28  ;;  %1028 = vmatprep.mubr.bf16.mxu1 %v1093_v29 }
  0x46   : > { %1013 = vmatmul.mubr.bf16.gmra.mrb[4].mxu0 %v1094_v30  ;;  %1029 = vmatmul.mubr.bf16.gmra.mrb[4].mxu1 %v1095_v31 }
  0x47   : > { %1016 = vmatprep.mubr.bf16.mxu0 %v1096_v32  ;;  %1032 = vmatprep.mubr.bf16.mxu1 %v1097_v33 }
  0x4e   : > { %1017 = vmatmul.mubr.bf16.gmra.mrb[8].mxu0 %v1098_v34  ;;  %1033 = vmatmul.mubr.bf16.gmra.mrb[8].mxu1 %v1099_v35 }
  0x4f   : > { %1020 = vmatprep.mubr.bf16.mxu0 %v1100_v36  ;;  %1036 = vmatprep.mubr.bf16.mxu1 %v1101_v37 }
  0x56   : > { %1021 = vmatmul.mubr.bf16.gmra.mrb[12].mxu0 %v1102_v38  ;;  %1037 = vmatmul.mubr.bf16.gmra.mrb[12].mxu1 %v1103_v39 }
 0x111   : > { %v1010_v40 = vpop.f32.mrb[0].mxu0  ;;  %v1026_v41 = vpop.f32.mrb[0].mxu1 }
 0x112   : > { %v566_v42 = vpop.f32.mrb[1].mxu0  ;;  %v630_v43 = vpop.f32.mrb[1].mxu1 }
 0x113   : > { %v1011_v44 = vpop.f32.mrb[2].mxu0  ;;  %v1027_v45 = vpop.f32.mrb[2].mxu1 }
 0x114   : > { %v569_v46 = vpop.f32.mrb[3].mxu0  ;;  %v633_v47 = vpop.f32.mrb[3].mxu1 }
 0x119   : > { %v1014_v48 = vpop.f32.mrb[4].mxu0  ;;  %v1030_v49 = vpop.f32.mrb[4].mxu1 }
 0x11a   : > { %v582_v50 = vpop.f32.mrb[5].mxu0  ;;  %v646_v51 = vpop.f32.mrb[5].mxu1 }
 0x11b   : > { %v1261_v52 = vpop.f32.mrb[6].mxu0  ;;  %v1263_v53 = vpop.f32.mrb[6].mxu1 }
 0x11c   : > { %v1265_v54 = vpop.f32.mrb[7].mxu0  ;;  %v1267_v55 = vpop.f32.mrb[7].mxu1 }
 0x121   : > { %v1018_v56 = vpop.f32.mrb[8].mxu0  ;;  %v1034_v57 = vpop.f32.mrb[8].mxu1 }
 0x122   : > { %v695_v58 = vmax.f32 %v1010_v40, %v1018_v56  ;;  %v703_v59 = vmax.f32 %v1026_v41, %v1034_v57  ;;  %v598_v60 = vpop.f32.mrb[9].mxu0  ;;  %v662_v61 = vpop.f32.mrb[9].mxu1 }
 0x123   : > { %v693_v63 = vmax.f32 %v566_v42, %v598_v60  ;;  %v701_v0 = vmax.f32 %v630_v43, %v662_v61  ;;  %v1019_v1 = vpop.f32.mrb[10].mxu0  ;;  %v1035_v2 = vpop.f32.mrb[10].mxu1 }
 0x124   : > { %v711_v3 = vmax.f32 %v695_v58, %v703_v59  ;;  %v696_v4 = vmax.f32 %v1011_v44, %v1019_v1  ;;  %v704_v5 = vmax.f32 %v1027_v45, %v1035_v2  ;;  %v601_v6 = vpop.f32.mrb[11].mxu0  ;;  %v665_v7 = vpop.f32.mrb[11].mxu1 }
 0x125   : > { %v709_v8 = vmax.f32 %v693_v63, %v701_v0  ;;  %v694_v9 = vmax.f32 %v569_v46, %v601_v6  ;;  %v702_v10 = vmax.f32 %v633_v47, %v665_v7 }
 0x126   : > { %v1272_v11 = vadd.f32 %v917_v62, %v711_v3  ;;  %v712_v12 = vmax.f32 %v696_v4, %v704_v5 }
 0x127   : > { %v1274_v13 = vadd.f32 %v917_v62, %v709_v8  ;;  %v710_v14 = vmax.f32 %v694_v9, %v702_v10 }
 0x128   : > { %v742_v15 = vmin.f32 %v1272_v11, 0.0  ;;  %v1277_v16 = vadd.f32 %v917_v62, %v712_v12  ;;  %vm734_vm0 = vcmp.gt.f32.partialorder %v1272_v11, 0.0 }
 0x129   : > { %v740_v17 = vmin.f32 %v1274_v13, 0.0  ;;  %v1280_v18 = vadd.f32 %v917_v62, %v710_v14  ;;  %v1022_v19 = vpop.f32.mrb[12].mxu0  ;;  %v1038_v20 = vpop.f32.mrb[12].mxu1  ;;  %vm732_vm2 = vcmp.gt.f32.partialorder %v1274_v13, 0.0 }
 0x12a   : > { %v752_v21 = vmul.f32 1.442695, %v742_v15  ;;  %v743_v22 = vmin.f32 %v1277_v16, 0.0  ;;  %v699_v23 = vmax.f32 %v1014_v48, %v1022_v19  ;;  %v614_v24 = vpop.f32.mrb[13].mxu0  ;;  %v678_v25 = vpop.f32.mrb[13].mxu1  ;;  %v707_v28 = vmax.f32 %v1030_v49, %v1038_v20 }
 0x12b   : > { %v748_v26 = vmul.f32 1.442695, %v740_v17  ;;  %v741_v27 = vmin.f32 %v1280_v18, 0.0  ;;  %v1023_v29 = vpop.f32.mrb[14].mxu0  ;;  %v1039_v30 = vpop.f32.mrb[14].mxu1  ;;  %v697_v32 = vmax.f32 %v582_v50, %v614_v24  ;;  %v705_v33 = vmax.f32 %v646_v51, %v678_v25 }
 0x12c   : > { %1104 = vpow2.f32 %v752_v21  ;;  %v754_v31 = vmul.f32 1.442695, %v743_v22  ;;  %v617_v34 = vpop.f32.mrb[15].mxu0  ;;  %v681_v35 = vpop.f32.mrb[15].mxu1  ;;  %v715_v37 = vmax.f32 %v699_v23, %v707_v28  ;;  %v700_v38 = vmax.f32 %v1261_v52, %v1023_v29 }
 0x12d   : > { %1106 = vpow2.f32 %v748_v26  ;;  %v750_v36 = vmul.f32 1.442695, %v741_v27  ;;  %v713_v39 = vmax.f32 %v697_v32, %v705_v33  ;;  %v708_v40 = vmax.f32 %v1263_v53, %v1039_v30 }
 0x12e   : > { %1108 = vpow2.f32 %v754_v31  ;;  %v698_v41 = vmax.f32 %v1265_v54, %v617_v34  ;;  %v730_v42 = vadd.f32 %v917_v62, %v715_v37  ;;  %v706_v43 = vmax.f32 %v1267_v55, %v681_v35 }
 0x12f   : > { %1110 = vpow2.f32 %v750_v36  ;;  %v728_v44 = vadd.f32 %v917_v62, %v713_v39  ;;  %v716_v45 = vmax.f32 %v700_v38, %v708_v40  ;;  %vm735_vm1 = vcmp.gt.f32.partialorder %v1277_v16, 0.0 }
 0x130   : > { %v746_v46 = vmin.f32 %v730_v42, 0.0  ;;  %v714_v47 = vmax.f32 %v698_v41, %v706_v43  ;;  %vm733_vm3 = vcmp.gt.f32.partialorder %v1280_v18, 0.0  ;;  %vm738_vm4 = vcmp.gt.f32.partialorder %v730_v42, 0.0 }
 0x131   : > { %v744_v48 = vmin.f32 %v728_v44, 0.0  ;;  %v731_v49 = vadd.f32 %v917_v62, %v716_v45  ;;  %vm736_vm6 = vcmp.gt.f32.partialorder %v728_v44, 0.0 }
 0x132   : > { %v760_v50 = vmul.f32 1.442695, %v746_v46  ;;  %v729_v51 = vadd.f32 %v917_v62, %v714_v47 }
 0x133   : > { %v756_v52 = vmul.f32 1.442695, %v744_v48  ;;  %v747_v56 = vmin.f32 %v731_v49, 0.0  ;;  %vm739_vm5 = vcmp.gt.f32.partialorder %v731_v49, 0.0 }
 0x134   : > { %1112 = vpow2.f32 %v760_v50  ;;  %v745_v53 = vmin.f32 %v729_v51, 0.0  ;;  %vm737_vm7 = vcmp.gt.f32.partialorder %v729_v51, 0.0 }
 0x135   : > { %1114 = vpow2.f32 %v756_v52  ;;  %v762_v54 = vmul.f32 1.442695, %v747_v56 }
 0x136   : > { %v1105_v57 = vpop.eup %1104  ;;  %v758_v55 = vmul.f32 1.442695, %v745_v53 }
 0x137   : > { %v1107_v58 = vpop.eup %1106  ;;  %v920_v59 = vadd.f32 -1.0, %v1105_v57  ;;  %1116 = vpow2.f32 %v762_v54 }
 0x138   : > { %v1109_v60 = vpop.eup %1108  ;;  %v918_v61 = vadd.f32 -1.0, %v1107_v58  ;;  %1118 = vpow2.f32 %v758_v55 }
 0x139   : > { %v1111_v63 = vpop.eup %1110  ;;  %v921_v0 = vadd.f32 -1.0, %v1109_v60  ;;  %v774_v1 = vsel %vm734_vm0, %v1272_v11, %v920_v59 }
 0x13a   : > { %v919_v62 = vadd.f32 -1.0, %v1111_v63  ;;  %v772_v3 = vsel %vm732_vm2, %v1274_v13, %v918_v61 }
 0x13b   : > { %v775_v2 = vsel %vm735_vm1, %v1277_v16, %v921_v0 }
 0x13c   : > { %v953_v4 = vpack.c.bf16 %v775_v2, %v774_v1  ;;  %v773_v5 = vsel %vm733_vm3, %v1280_v18, %v919_v62 }
 0x13d   : > { %v948_v6 = vpack.c.bf16 %v773_v5, %v772_v3 }
 0x13e   : > { %965 = vst [vmem:[%s337_s28 + $0x8] sm:$0xff] %v953_v4   ;;  %v1113_v7 = vpop.eup %1112 }
 0x13f   : > { %949 = vst [vmem:[%s337_s28] sm:$0xff] %v948_v6   ;;  %v1115_v8 = vpop.eup %1114  ;;  %v924_v9 = vadd.f32 -1.0, %v1113_v7 }
 0x140   : > { %v922_v11 = vadd.f32 -1.0, %v1115_v8 }
 0x141   : > { %v1117_v10 = vpop.eup %1116  ;;  %v778_v16 = vsel %vm738_vm4, %v730_v42, %v924_v9 }
 0x142   : > { %v1119_v12 = vpop.eup %1118  ;;  %v925_v14 = vadd.f32 -1.0, %v1117_v10  ;;  %v776_v13 = vsel %vm736_vm6, %v728_v44, %v922_v11 }
 0x143   : > { %v923_v15 = vadd.f32 -1.0, %v1119_v12 }
 0x144   : > { %v779_v17 = vsel %vm739_vm5, %v731_v49, %v925_v14 }
 0x145   : > { %v963_v19 = vpack.c.bf16 %v779_v17, %v778_v16  ;;  %v777_v18 = vsel %vm737_vm7, %v729_v51, %v923_v15 }
 0x146   : > { %v958_v20 = vpack.c.bf16 %v777_v18, %v776_v13 }
 0x147   : > { %967 = vst [vmem:[%s337_s28 + $0x18] sm:$0xff] %v963_v19  }
 0x148   : > { %966 = vst [vmem:[%s337_s28 + $0x10] sm:$0xff] %v958_v20  }
 0x149 PF: > { %p10_p9 = scmp.ge.s32.totalorder %s1181_s16, 4   ;;  %s1315_s12 = smov %s1138_s13 }
 0x14a   : > { %s1316_s13 = smov %s1190_s19  ;;  %s1317_s14 = smov %s1181_s16 }
 0x14b   :  { %12 = sbr.rel (!%p10_p9) target bundleno = 2 (0x2), region = 108 }

// kernel: forward.5
= control target key start
LH: loop header
LB: loop body
LE: loop exit
PB: predicated region body
PF: predicated region fallthrough
CT: control target
= control target key end

     0   :  { %s678_s12 = smov 0   ;;  %s680_s13 = smov 0   ;;  %s757_s0 = inlined_call_operand.vmem [shape: bf16[4,32,128], index: 0, kind: input, shape index: {}]   ;;  %s758_s1 = inlined_call_operand.vmem [shape: bf16[128,128], index: 1, kind: input, shape index: {}]   ;;  %s759_s2 = inlined_call_operand.vmem [shape: f32[1,128], index: 2, kind: input, shape index: {}]   ;;  %s760_s3 = inlined_call_operand.vmem [shape: bf16[32,128], index: 3, kind: output, shape index: {}]  }
   0x1   :  { %s682_s14 = smov 0  }
   0x2 LB: > { %s504_s15 = sadd.s32 4294967295, %s656_s14   ;;  %s695_s16 = sadd.s32 1, %s656_s14   ;;  %s656_s14 = sphi %s682_s14, %s763_s14   ;;  %s652_s13 = sphi %s680_s13, %s762_s13   ;;  %s648_s12 = sphi %s678_s12, %s761_s12  }
   0x3   : > { %s17_s17 = ssub.s32 %s656_s14, %s695_s16  ;;  %s20_s18 = sadd.s32 1, %s652_s13 }
   0x4   : > { %p18_p0 = scmp.eq.s32.totalorder %s17_s17, 0  ;;  %p27_p1 = scmp.ne.s32.totalorder %s652_s13, %s648_s12 }
   0x5   : > { %p28_p2 = scmp.eq.s32.totalorder %s656_s14, 0  ;;  %p507_p4 = scmp.ge.s32.totalorder %s656_s14, 2 }
   0x6   : > { %s704_s19 = scalar_select %p18_p0, %s652_s13, %s20_s18  }
   0x7   : > { %p29_p3 = por %p28_p2, %p27_p1  ;;  %127 = sbr.rel (%p507_p4) target bundleno = 21 (0x15), region = 24 }
   0xe   : > { %130 = sbr.rel (!%p29_p3) target bundleno = 21 (0x15), region = 28  ;;  %s132_s20 = sand.u32 (%p29_p3), 1, %s652_s13  }
   0xf   : > { %s534_s21 = sshll.u32 (%p29_p3), %s656_s14, 3  ;;  %s508_s22 = sshll.u32 (%p29_p3), %s132_s20, 5 }
  0x10   : > { %s137_s25 = scalar_lea.vmem (%p29_p3), %s757_s0, %s534_s21  ;;  %s134_s26 = scalar_lea.vmem (%p29_p3), [#allocation2], %s508_s22 }
  0x11   : > { %v153_v0 = vld [vmem:[%s137_s25] sm:$0xff] (%p29_p3)   ;;  %v157_v1 = vld [vmem:[%s137_s25 + $0x10] sm:$0xff] (%p29_p3)  }
  0x12   : > { %v161_v2 = vld [vmem:[%s137_s25 + $0x20] sm:$0xff] (%p29_p3)   ;;  %154 = vst [vmem:[%s134_s26] sm:$0xff] (%p29_p3), %v153_v0   ;;  %158 = vst [vmem:[%s134_s26 + $0x8] sm:$0xff] (%p29_p3), %v157_v1   ;;  %v165_v3 = vld [vmem:[%s137_s25 + $0x30] sm:$0xff] (%p29_p3)  }
  0x13   : > { %162 = vst [vmem:[%s134_s26 + $0x10] sm:$0xff] (%p29_p3), %v161_v2   ;;  %166 = vst [vmem:[%s134_s26 + $0x18] sm:$0xff] (%p29_p3), %v165_v3  }
  0x15 PF: > { %p511_p5 = scmp.ge.s32.totalorder %s656_s14, 1  ;;  %p206_p6 = scmp.lt.s32.totalorder %s656_s14, 3 }
  0x17   : > { %p207_p7 = pnand %p511_p5, %p206_p6 }
  0x18   : > { %v618_v4 = vld [vmem:[%s758_s1] sm:$0xff] (!%p207_p7)   ;;  %s213_s29 = sand.u32 (!%p207_p7), 1, %s648_s12   ;;  %v619_v5 = vld [vmem:[%s758_s1 + $0x8] sm:$0xff] (!%p207_p7)   ;;  %v620_v6 = vld [vmem:[%s758_s1 + $0x10] sm:$0xff] (!%p207_p7)   ;;  %s513_s26 = sshll.u32 (!%p207_p7), %s504_s15, 1 }
  0x19   : > { %210 = sbr.rel (%p207_p7) target bundleno = 299 (0x12b), region = 69  ;;  %554 = vmatprep.subr.bf16.mxu0 (!%p207_p7), %v618_v4  ;;  %578 = vmatprep.subr.bf16.mxu1 (!%p207_p7), %v618_v4  ;;  %s512_s5 = sshll.u32 (!%p207_p7), %s213_s29, 5  ;;  %v621_v7 = vld [vmem:[%s758_s1 + $0x18] sm:$0xff] (!%p207_p7)   ;;  %v622_v10 = vld [vmem:[%s758_s1 + $0x20] sm:$0xff] (!%p207_p7)   ;;  %v623_v11 = vld [vmem:[%s758_s1 + $0x28] sm:$0xff] (!%p207_p7)  }
  0x1a   : > { %555 = vmatpush3.bf16.msra.mxu0 (!%p207_p7), %v618_v4  ;;  %586 = vmatpush3.bf16.msra.mxu1 (!%p207_p7), %v618_v4  ;;  %s215_s10 = scalar_lea.vmem (!%p207_p7), [#allocation2], %s512_s5  ;;  %v624_v12 = vld [vmem:[%s758_s1 + $0x30] sm:$0xff] (!%p207_p7)   ;;  %v625_v13 = vld [vmem:[%s758_s1 + $0x38] sm:$0xff] (!%p207_p7)   ;;  %v527_v24 = vld [vmem:[%s759_s2] ss:$0 sm:$0xff] (!%p207_p7)  ;;  %p238_p8 = scmp.lt.s32.totalorder (!%p207_p7), %s513_s26, 3 }
  0x1b   : > { %556 = vmatprep.subr.bf16.mxu0 (!%p207_p7), %v619_v5  ;;  %579 = vmatprep.subr.bf16.mxu1 (!%p207_p7), %v619_v5  ;;  %v626_v8 = vld [vmem:[%s215_s10] sm:$0xff] (!%p207_p7)   ;;  %v627_v9 = vld [vmem:[%s215_s10 + $0x10] sm:$0xff] (!%p207_p7)   ;;  %v628_v14 = vld [vmem:[%s215_s10 + $0x8] sm:$0xff] (!%p207_p7)  }
  0x1c   : > { %570 = vmatprep.mubr.bf16.mxu0 (!%p207_p7), %v626_v8  ;;  %574 = vmatprep.mubr.bf16.mxu1 (!%p207_p7), %v627_v9  ;;  %v629_v15 = vld [vmem:[%s215_s10 + $0x18] sm:$0xff] (!%p207_p7)  }
  0x1e   : > { %557 = vmatpush3.bf16.msra.mxu0 (!%p207_p7), %v619_v5  ;;  %587 = vmatpush3.bf16.msra.mxu1 (!%p207_p7), %v619_v5 }
  0x1f   : > { %558 = vmatprep.subr.bf16.mxu0 (!%p207_p7), %v620_v6  ;;  %580 = vmatprep.subr.bf16.mxu1 (!%p207_p7), %v620_v6 }
  0x20   : > { %s765_s26 = smov (!%p238_p8, %s513_s26), 3 }
  0x21   : > { %s514_s27 = sshll.u32 %s765_s26, 2 }
  0x22   : > { %559 = vmatpush3.bf16.msra.mxu0 %v620_v6  ;;  %588 = vmatpush3.bf16.msra.mxu1 %v620_v6  ;;  %s241_s30 = scalar_lea.vmem %s760_s3, %s514_s27 }
  0x23   : > { %560 = vmatprep.subr.bf16.mxu0 %v621_v7  ;;  %581 = vmatprep.subr.bf16.mxu1 %v621_v7 }
  0x26   : > { %561 = vmatpush3.bf16.msra.mxu0 %v621_v7  ;;  %589 = vmatpush3.bf16.msra.mxu1 %v621_v7 }
  0x27   : > { %562 = vmatprep.subr.bf16.mxu0 %v622_v10  ;;  %582 = vmatprep.subr.bf16.mxu1 %v622_v10 }
  0x2a   : > { %563 = vmatpush3.bf16.msra.mxu0 %v622_v10  ;;  %590 = vmatpush3.bf16.msra.mxu1 %v622_v10 }
  0x2b   : > { %564 = vmatprep.subr.bf16.mxu0 %v623_v11  ;;  %583 = vmatprep.subr.bf16.mxu1 %v623_v11 }
  0x2e   : > { %565 = vmatpush3.bf16.msra.mxu0 %v623_v11  ;;  %591 = vmatpush3.bf16.msra.mxu1 %v623_v11 }
  0x2f   : > { %566 = vmatprep.subr.bf16.mxu0 %v624_v12  ;;  %584 = vmatprep.subr.bf16.mxu1 %v624_v12 }
  0x32   : > { %567 = vmatpush3.bf16.msra.mxu0 %v624_v12  ;;  %592 = vmatpush3.bf16.msra.mxu1 %v624_v12 }
  0x33   : > { %568 = vmatprep.subr.bf16.mxu0 %v625_v13  ;;  %585 = vmatprep.subr.bf16.mxu1 %v625_v13 }
  0x36   : > { %569 = vmatpush3.bf16.msra.mxu0 %v625_v13  ;;  %593 = vmatpush3.bf16.msra.mxu1 %v625_v13 }
  0x39   : > { %571 = vmatmul.mubr.bf16.vlgmr.msra.gmra.mrb[0].mxu0 %v628_v14  ;;  %575 = vmatmul.mubr.bf16.vlgmr.msra.gmra.mrb[0].mxu1 %v629_v15 }
 0x10c   : > { %v572_v16 = vpop.f32.mrb[0].mxu0  ;;  %v576_v17 = vpop.f32.mrb[0].mxu1 }
 0x10d   : > { %v374_v18 = vpop.f32.mrb[1].mxu0  ;;  %v390_v19 = vpop.f32.mrb[1].mxu1 }
 0x10e   : > { %v405_v20 = vmax.f32 %v374_v18, %v572_v16  ;;  %v407_v21 = vmax.f32 %v390_v19, %v576_v17  ;;  %v573_v22 = vpop.f32.mrb[2].mxu0  ;;  %v577_v23 = vpop.f32.mrb[2].mxu1 }
 0x10f   : > { %v377_v25 = vpop.f32.mrb[3].mxu0  ;;  %v393_v26 = vpop.f32.mrb[3].mxu1 }
 0x110   : > { %v409_v27 = vmax.f32 %v405_v20, %v407_v21  ;;  %v406_v28 = vmax.f32 %v377_v25, %v573_v22  ;;  %v408_v29 = vmax.f32 %v393_v26, %v577_v23 }
 0x112   : > { %v418_v30 = vadd.f32 %v527_v24, %v409_v27  ;;  %v410_v31 = vmax.f32 %v406_v28, %v408_v29 }
 0x114   : > { %v422_v32 = vmin.f32 %v418_v30, 0.0  ;;  %v419_v33 = vadd.f32 %v527_v24, %v410_v31  ;;  %vm420_vm0 = vcmp.gt.f32.partialorder %v418_v30, 0.0 }
 0x116   : > { %v424_v34 = vmul.f32 1.442695, %v422_v32  ;;  %v423_v35 = vmin.f32 %v419_v33, 0.0  ;;  %vm421_vm1 = vcmp.gt.f32.partialorder %v419_v33, 0.0 }
 0x118   : > { %630 = vpow2.f32 %v424_v34  ;;  %v426_v36 = vmul.f32 1.442695, %v423_v35 }
 0x11a   : > { %632 = vpow2.f32 %v426_v36 }
 0x122   : > { %v631_v37 = vpop.eup %630 }
 0x123   : > { %v528_v38 = vadd.f32 -1.0, %v631_v37 }
 0x124   : > { %v633_v39 = vpop.eup %632 }
 0x125   : > { %v529_v40 = vadd.f32 -1.0, %v633_v39  ;;  %v430_v41 = vsel %vm420_vm0, %v418_v30, %v528_v38 }
 0x127   : > { %v431_v42 = vsel %vm421_vm1, %v419_v33, %v529_v40 }
 0x128   : > { %v540_v43 = vpack.c.bf16 %v431_v42, %v430_v41 }
 0x12a   : > { %541 = vst [vmem:[%s241_s30] sm:$0xff] %v540_v43  }
 0x12b PF: > { %p10_p9 = scmp.ge.s32.totalorder %s695_s16, 4   ;;  %s761_s12 = smov %s652_s13 }
 0x12c   : > { %s762_s13 = smov %s704_s19  ;;  %s763_s14 = smov %s695_s16 }
 0x12d   :  { %12 = sbr.rel (!%p10_p9) target bundleno = 2 (0x2), region = 108 }

// kernel: forward.6
= control target key start
LH: loop header
LB: loop body
LE: loop exit
PB: predicated region body
PF: predicated region fallthrough
CT: control target
= control target key end

     0   :  { %s371_s1 = inlined_call_operand.vmem [shape: bf16[128,128], index: 1, kind: input, shape index: {}]   ;;  %s372_s0 = inlined_call_operand.vmem [shape: bf16[4,16,128], index: 0, kind: input, shape index: {}]   ;;  %s373_s2 = inlined_call_operand.vmem [shape: f32[1,128], index: 2, kind: input, shape index: {}]   ;;  %s374_s3 = inlined_call_operand.vmem [shape: bf16[16,128], index: 3, kind: output, shape index: {}]  }
   0x1   :  { %v293_v0 = vld [vmem:[%s371_s1] sm:$0xff]   ;;  %v294_v1 = vld [vmem:[%s371_s1 + $0x8] sm:$0xff]   ;;  %v295_v2 = vld [vmem:[%s371_s1 + $0x10] sm:$0xff]  }
   0x2   :  { %253 = vmatprep.subr.bf16.mxu0 %v293_v0  ;;  %277 = vmatprep.subr.bf16.mxu1 %v293_v0  ;;  %v296_v3 = vld [vmem:[%s371_s1 + $0x18] sm:$0xff]   ;;  %v301_v4 = vld [vmem:[%s372_s0] sm:$0xff]   ;;  %v302_v5 = vld [vmem:[%s372_s0 + $0x10] sm:$0xff]  }
   0x3   :  { %254 = vmatpush3.bf16.msra.mxu0 %v293_v0  ;;  %285 = vmatpush3.bf16.msra.mxu1 %v293_v0  ;;  %v297_v6 = vld [vmem:[%s371_s1 + $0x20] sm:$0xff]   ;;  %v298_v7 = vld [vmem:[%s371_s1 + $0x28] sm:$0xff]   ;;  %v299_v8 = vld [vmem:[%s371_s1 + $0x30] sm:$0xff]  }
   0x4   :  { %255 = vmatprep.subr.bf16.mxu0 %v294_v1  ;;  %278 = vmatprep.subr.bf16.mxu1 %v294_v1  ;;  %v300_v9 = vld [vmem:[%s371_s1 + $0x38] sm:$0xff]   ;;  %v303_v10 = vld [vmem:[%s372_s0 + $0x8] sm:$0xff]   ;;  %v229_v20 = vld [vmem:[%s373_s2] ss:$0 sm:$0xff] }
   0x5   :  { %269 = vmatprep.mubr.bf16.mxu0 %v301_v4  ;;  %273 = vmatprep.mubr.bf16.mxu1 %v302_v5  ;;  %v304_v11 = vld [vmem:[%s372_s0 + $0x18] sm:$0xff]  }
   0x7   :  { %256 = vmatpush3.bf16.msra.mxu0 %v294_v1  ;;  %286 = vmatpush3.bf16.msra.mxu1 %v294_v1 }
   0x8   :  { %257 = vmatprep.subr.bf16.mxu0 %v295_v2  ;;  %279 = vmatprep.subr.bf16.mxu1 %v295_v2 }
   0xb   :  { %258 = vmatpush3.bf16.msra.mxu0 %v295_v2  ;;  %287 = vmatpush3.bf16.msra.mxu1 %v295_v2 }
   0xc   :  { %259 = vmatprep.subr.bf16.mxu0 %v296_v3  ;;  %280 = vmatprep.subr.bf16.mxu1 %v296_v3 }
   0xf   :  { %260 = vmatpush3.bf16.msra.mxu0 %v296_v3  ;;  %288 = vmatpush3.bf16.msra.mxu1 %v296_v3 }
  0x10   :  { %261 = vmatprep.subr.bf16.mxu0 %v297_v6  ;;  %281 = vmatprep.subr.bf16.mxu1 %v297_v6 }
  0x13   :  { %262 = vmatpush3.bf16.msra.mxu0 %v297_v6  ;;  %289 = vmatpush3.bf16.msra.mxu1 %v297_v6 }
  0x14   :  { %263 = vmatprep.subr.bf16.mxu0 %v298_v7  ;;  %282 = vmatprep.subr.bf16.mxu1 %v298_v7 }
  0x17   :  { %264 = vmatpush3.bf16.msra.mxu0 %v298_v7  ;;  %290 = vmatpush3.bf16.msra.mxu1 %v298_v7 }
  0x18   :  { %265 = vmatprep.subr.bf16.mxu0 %v299_v8  ;;  %283 = vmatprep.subr.bf16.mxu1 %v299_v8 }
  0x1b   :  { %266 = vmatpush3.bf16.msra.mxu0 %v299_v8  ;;  %291 = vmatpush3.bf16.msra.mxu1 %v299_v8 }
  0x1c   :  { %267 = vmatprep.subr.bf16.mxu0 %v300_v9  ;;  %284 = vmatprep.subr.bf16.mxu1 %v300_v9 }
  0x1f   :  { %268 = vmatpush3.bf16.msra.mxu0 %v300_v9  ;;  %292 = vmatpush3.bf16.msra.mxu1 %v300_v9 }
  0x22   :  { %270 = vmatmul.mubr.bf16.vlgmr.msra.gmra.mrb[0].mxu0 %v303_v10  ;;  %274 = vmatmul.mubr.bf16.vlgmr.msra.gmra.mrb[0].mxu1 %v304_v11 }
  0xf5   :  { %v271_v12 = vpop.f32.mrb[0].mxu0  ;;  %v275_v13 = vpop.f32.mrb[0].mxu1 }
  0xf6   :  { %v145_v14 = vpop.f32.mrb[1].mxu0  ;;  %v161_v15 = vpop.f32.mrb[1].mxu1 }
  0xf7   :  { %v176_v16 = vmax.f32 %v145_v14, %v271_v12  ;;  %v178_v17 = vmax.f32 %v161_v15, %v275_v13  ;;  %v272_v18 = vpop.f32.mrb[2].mxu0  ;;  %v276_v19 = vpop.f32.mrb[2].mxu1 }
  0xf8   :  { %v148_v21 = vpop.f32.mrb[3].mxu0  ;;  %v164_v22 = vpop.f32.mrb[3].mxu1 }
  0xf9   :  { %v180_v23 = vmax.f32 %v176_v16, %v178_v17  ;;  %v177_v24 = vmax.f32 %v148_v21, %v272_v18  ;;  %v179_v25 = vmax.f32 %v164_v22, %v276_v19 }
  0xfb   :  { %v189_v26 = vadd.f32 %v229_v20, %v180_v23  ;;  %v181_v27 = vmax.f32 %v177_v24, %v179_v25 }
  0xfd   :  { %v193_v28 = vmin.f32 %v189_v26, 0.0  ;;  %v190_v29 = vadd.f32 %v229_v20, %v181_v27  ;;  %vm191_vm0 = vcmp.gt.f32.partialorder %v189_v26, 0.0 }
  0xff   :  { %v195_v30 = vmul.f32 1.442695, %v193_v28  ;;  %v194_v31 = vmin.f32 %v190_v29, 0.0  ;;  %vm192_vm1 = vcmp.gt.f32.partialorder %v190_v29, 0.0 }
 0x101   :  { %305 = vpow2.f32 %v195_v30  ;;  %v197_v32 = vmul.f32 1.442695, %v194_v31 }
 0x103   :  { %307 = vpow2.f32 %v197_v32 }
 0x10b   :  { %v306_v33 = vpop.eup %305 }
 0x10c   :  { %v230_v34 = vadd.f32 -1.0, %v306_v33 }
 0x10d   :  { %v308_v35 = vpop.eup %307 }
 0x10e   :  { %v231_v36 = vadd.f32 -1.0, %v308_v35  ;;  %v201_v37 = vsel %vm191_vm0, %v189_v26, %v230_v34 }
 0x110   :  { %v202_v38 = vsel %vm192_vm1, %v190_v29, %v231_v36 }
 0x111   :  { %v239_v39 = vpack.c.bf16 %v202_v38, %v201_v37 }
 0x113   :  { %240 = vst [vmem:[%s374_s3] sm:$0xff] %v239_v39  }

// kernel: forward.7
= control target key start
LH: loop header
LB: loop body
LE: loop exit
PB: predicated region body
PF: predicated region fallthrough
CT: control target
= control target key end

     0   :  { %v612_v25 = vmov 0.0   ;;  %vm613_vm0 = vmmov 0   ;;  %s744_s1 = inlined_call_operand.vmem [shape: bf16[256,128], index: 1, kind: input, shape index: {}]   ;;  %s745_s0 = inlined_call_operand.vmem [shape: bf16[4,16,256], index: 0, kind: input, shape index: {}]   ;;  %s746_s3 = inlined_call_operand.vmem [shape: bf16[128,128], index: 3, kind: input, shape index: {}]   ;;  %s747_s2 = inlined_call_operand.vmem [shape: f32[1,128], index: 2, kind: input, shape index: {}]   ;;  %s748_s4 = inlined_call_operand.vmem [shape: f32[16,128], index: 4, kind: output, shape index: {}]  }
   0x1   :  { %v556_v0 = vld [vmem:[%s744_s1 + $0x40] sm:$0xff]   ;;  %v558_v2 = vld [vmem:[%s744_s1 + $0x48] sm:$0xff]   ;;  %v560_v4 = vld [vmem:[%s744_s1 + $0x50] sm:$0xff]   ;;  %534 = vmatprep.subr.bf16.mxu1 %v612_v25  ;;  %550 = vmatprep.mubr.msk.bf16.mxu1 %vm613_vm0, %v612_v25 }
   0x2   :  { %v557_v1 = vld [vmem:[%s744_s1] sm:$0xff]   ;;  %485 = vmatprep.subr.bf16.mxu0 %v556_v0  ;;  %v559_v3 = vld [vmem:[%s744_s1 + $0x8] sm:$0xff]   ;;  %v561_v5 = vld [vmem:[%s744_s1 + $0x10] sm:$0xff]  }
   0x3   :  { %486 = vmatpush3.bf16.msra.mxu0 %v557_v1  ;;  %v562_v6 = vld [vmem:[%s744_s1 + $0x58] sm:$0xff]   ;;  %v564_v8 = vld [vmem:[%s744_s1 + $0x60] sm:$0xff]   ;;  %v566_v10 = vld [vmem:[%s744_s1 + $0x68] sm:$0xff]  }
   0x4   :  { %487 = vmatprep.subr.bf16.mxu0 %v558_v2  ;;  %v563_v7 = vld [vmem:[%s744_s1 + $0x18] sm:$0xff]   ;;  %v565_v9 = vld [vmem:[%s744_s1 + $0x20] sm:$0xff]   ;;  %v567_v12 = vld [vmem:[%s744_s1 + $0x28] sm:$0xff]  }
   0x5   :  { %v574_v11 = vld [vmem:[%s745_s0 + $0x4] ss:$8 sps:$4 sm:$0xff]   ;;  %v568_v13 = vld [vmem:[%s744_s1 + $0x70] sm:$0xff]   ;;  %v570_v15 = vld [vmem:[%s744_s1 + $0x78] sm:$0xff]  }
   0x6   :  { %226 = vmatprep.mubr.bf16.mxu0 %v574_v11  ;;  %v569_v14 = vld [vmem:[%s744_s1 + $0x30] sm:$0xff]   ;;  %v571_v16 = vld [vmem:[%s744_s1 + $0x38] sm:$0xff]   ;;  %v572_v17 = vld [vmem:[%s745_s0] ss:$8 sps:$4 sm:$0xff]  }
   0x7   :  { %488 = vmatpush3.bf16.msra.mxu0 %v559_v3  ;;  %v575_v18 = vld [vmem:[%s745_s0 + $0x14] ss:$8 sps:$4 sm:$0xff]   ;;  %v577_v19 = vld [vmem:[%s745_s0 + $0x10] ss:$8 sps:$4 sm:$0xff]   ;;  %v578_v20 = vld [vmem:[%s745_s0 + $0x24] ss:$8 sps:$4 sm:$0xff]  }
   0x8   :  { %489 = vmatprep.subr.bf16.mxu0 %v560_v4  ;;  %v580_v21 = vld [vmem:[%s745_s0 + $0x20] ss:$8 sps:$4 sm:$0xff]   ;;  %v581_v22 = vld [vmem:[%s745_s0 + $0x34] ss:$8 sps:$4 sm:$0xff]   ;;  %v583_v23 = vld [vmem:[%s745_s0 + $0x30] ss:$8 sps:$4 sm:$0xff]  }
   0x9   :  { %v584_v24 = vld [vmem:[%s746_s3] sm:$0xff]   ;;  %v585_v26 = vld [vmem:[%s746_s3 + $0x8] sm:$0xff]   ;;  %v586_v27 = vld [vmem:[%s746_s3 + $0x10] sm:$0xff]  }
   0xa   :  { %535 = vmatpush3.bf16.msra.mxu1 %v584_v24  ;;  %v587_v28 = vld [vmem:[%s746_s3 + $0x18] sm:$0xff]   ;;  %v588_v29 = vld [vmem:[%s746_s3 + $0x20] sm:$0xff]   ;;  %v589_v30 = vld [vmem:[%s746_s3 + $0x28] sm:$0xff]  }
   0xb   :  { %490 = vmatpush3.bf16.msra.mxu0 %v561_v5  ;;  %536 = vmatprep.subr.bf16.mxu1 %v612_v25  ;;  %v590_v31 = vld [vmem:[%s746_s3 + $0x30] sm:$0xff]   ;;  %v591_v32 = vld [vmem:[%s746_s3 + $0x38] sm:$0xff]   ;;  %v474_v60 = vld [vmem:[%s747_s2] ss:$0 sm:$0xff] }
   0xc   :  { %491 = vmatprep.subr.bf16.mxu0 %v562_v6 }
   0xe   :  { %537 = vmatpush3.bf16.msra.mxu1 %v585_v26 }
   0xf   :  { %492 = vmatpush3.bf16.msra.mxu0 %v563_v7  ;;  %538 = vmatprep.subr.bf16.mxu1 %v612_v25 }
  0x10   :  { %493 = vmatprep.subr.bf16.mxu0 %v564_v8 }
  0x12   :  { %539 = vmatpush3.bf16.msra.mxu1 %v586_v27 }
  0x13   :  { %494 = vmatpush3.bf16.msra.mxu0 %v565_v9  ;;  %540 = vmatprep.subr.bf16.mxu1 %v612_v25 }
  0x14   :  { %495 = vmatprep.subr.bf16.mxu0 %v566_v10 }
  0x16   :  { %541 = vmatpush3.bf16.msra.mxu1 %v587_v28 }
  0x17   :  { %496 = vmatpush3.bf16.msra.mxu0 %v567_v12  ;;  %542 = vmatprep.subr.bf16.mxu1 %v612_v25 }
  0x18   :  { %497 = vmatprep.subr.bf16.mxu0 %v568_v13  ;;  %v392_v13 = vlaneseq }
  0x1a   :  { %543 = vmatpush3.bf16.msra.mxu1 %v588_v29 }
  0x1b   :  { %498 = vmatpush3.bf16.msra.mxu0 %v569_v14  ;;  %544 = vmatprep.subr.bf16.mxu1 %v612_v25  ;;  %v393_v14 = vand.u32 127, %v392_v13 }
  0x1c   :  { %499 = vmatprep.subr.bf16.mxu0 %v570_v15 }
  0x1d   :  { %vm419_vm3 = vcmp.ge.s32.totalorder %v393_v14, 2  ;;  %vm420_vm4 = vcmp.lt.s32.totalorder %v393_v14, 5  ;;  %vm395_vm6 = vcmp.lt.s32.totalorder %v393_v14, 2 }
  0x1e   :  { %545 = vmatpush3.bf16.msra.mxu1 %v589_v30  ;;  %vm421_vm5 = vmand %vm419_vm3, %vm420_vm4 }
  0x1f   :  { %500 = vmatpush3.bf16.msra.mxu0 %v571_v16  ;;  %546 = vmatprep.subr.bf16.mxu1 %v612_v25 }
  0x22   :  { %227 = vmatmul.mubr.bf16.vlgmr.msra.gmra.mrb[0].mxu0 %v572_v17  ;;  %547 = vmatpush3.bf16.msra.mxu1 %v590_v31 }
  0x23   :  { %234 = vmatprep.mubr.bf16.mxu0 %v575_v18  ;;  %548 = vmatprep.subr.bf16.mxu1 %v612_v25 }
  0x26   :  { %549 = vmatpush3.bf16.msra.mxu1 %v591_v32 }
  0x2a   :  { %235 = vmatmul.mubr.bf16.gmra.mrb[4].mxu0 %v577_v19 }
  0x2b   :  { %242 = vmatprep.mubr.bf16.mxu0 %v578_v20 }
  0x32   :  { %243 = vmatmul.mubr.bf16.gmra.mrb[8].mxu0 %v580_v21 }
  0x33   :  { %250 = vmatprep.mubr.bf16.mxu0 %v581_v22 }
  0x3a   :  { %251 = vmatmul.mubr.bf16.gmra.mrb[12].mxu0 %v583_v23 }
  0xf5   :  { %v501_v33 = vpop.f32.mrb[0].mxu0 }
  0xf6   :  { %v502_v34 = vpop.f32.mrb[1].mxu0 }
  0xf7   :  { %v503_v35 = vadd.f32 %v502_v34, %v501_v33  ;;  %v504_v36 = vpop.f32.mrb[2].mxu0 }
  0xf8   :  { %v505_v37 = vpop.f32.mrb[3].mxu0 }
  0xf9   :  { %v506_v38 = vadd.f32 %v505_v37, %v504_v36 }
  0xfd   :  { %v507_v39 = vpop.f32.mrb[4].mxu0 }
  0xfe   :  { %v508_v40 = vpop.f32.mrb[5].mxu0 }
  0xff   :  { %v509_v41 = vadd.f32 %v508_v40, %v507_v39  ;;  %v510_v42 = vpop.f32.mrb[6].mxu0 }
 0x100   :  { %v511_v43 = vpop.f32.mrb[7].mxu0 }
 0x101   :  { %v259_v44 = vmax.f32 %v503_v35, %v509_v41  ;;  %v512_v45 = vadd.f32 %v511_v43, %v510_v42 }
 0x103   :  { %v260_v46 = vmax.f32 %v506_v38, %v512_v45 }
 0x105   :  { %v513_v47 = vpop.f32.mrb[8].mxu0 }
 0x106   :  { %v514_v48 = vpop.f32.mrb[9].mxu0 }
 0x107   :  { %v515_v49 = vadd.f32 %v514_v48, %v513_v47  ;;  %v516_v50 = vpop.f32.mrb[10].mxu0 }
 0x108   :  { %v517_v51 = vpop.f32.mrb[11].mxu0 }
 0x109   :  { %v518_v52 = vadd.f32 %v517_v51, %v516_v50 }
 0x10d   :  { %v519_v53 = vpop.f32.mrb[12].mxu0 }
 0x10e   :  { %v520_v54 = vpop.f32.mrb[13].mxu0 }
 0x10f   :  { %v521_v55 = vadd.f32 %v520_v54, %v519_v53  ;;  %v522_v56 = vpop.f32.mrb[14].mxu0 }
 0x110   :  { %v523_v57 = vpop.f32.mrb[15].mxu0 }
 0x111   :  { %v261_v58 = vmax.f32 %v515_v49, %v521_v55  ;;  %v524_v59 = vadd.f32 %v523_v57, %v522_v56 }
 0x113   :  { %v263_v61 = vmax.f32 %v259_v44, %v261_v58  ;;  %v262_v62 = vmax.f32 %v518_v52, %v524_v59 }
 0x115   :  { %v272_v63 = vadd.f32 %v474_v60, %v263_v61  ;;  %v264_v0 = vmax.f32 %v260_v46, %v262_v62 }
 0x117   :  { %v276_v1 = vmin.f32 %v272_v63, 0.0  ;;  %v273_v2 = vadd.f32 %v474_v60, %v264_v0  ;;  %vm274_vm1 = vcmp.gt.f32.partialorder %v272_v63, 0.0 }
 0x119   :  { %v278_v3 = vmul.f32 1.442695, %v276_v1  ;;  %v277_v4 = vmin.f32 %v273_v2, 0.0  ;;  %vm275_vm2 = vcmp.gt.f32.partialorder %v273_v2, 0.0 }
 0x11b   :  { %592 = vpow2.f32 %v278_v3  ;;  %v280_v5 = vmul.f32 1.442695, %v277_v4 }
 0x11d   :  { %594 = vpow2.f32 %v280_v5 }
 0x125   :  { %v593_v6 = vpop.eup %592 }
 0x126   :  { %v475_v7 = vadd.f32 -1.0, %v593_v6 }
 0x127   :  { %v595_v8 = vpop.eup %594 }
 0x128   :  { %v476_v9 = vadd.f32 -1.0, %v595_v8  ;;  %v284_v10 = vsel %vm274_vm1, %v272_v63, %v475_v7 }
 0x12a   :  { %v285_v11 = vsel %vm275_vm2, %v273_v2, %v476_v9 }
 0x12b   :  { %v286_v12 = vpack.c.bf16 %v285_v11, %v284_v10 }
 0x12d   :  { %551 = vmatmul.mubr.bf16.vlgmr.msra.gmra.mrb[0].mxu1 %v286_v12 }
 0x200   :  { %v385_v15 = vpop.f32.mrb[0].mxu1 }
 0x201   :  { %v552_v16 = vpop.f32.mrb[1].mxu1  ;;  %v422_v17 = vsel %vm421_vm5, %v385_v15, -inf  ;;  %v397_v18 = vsel %vm395_vm6, %v385_v15, -inf }
 0x202   :  { %424 = vmax.xlane.f32.xlu1 %v422_v17  ;;  %399 = vmax.xlane.f32.xlu0 %v397_v18  ;;  %v388_v19 = vpop.f32.mrb[2].mxu1 }
 0x203   :  { %v553_v20 = vpop.f32.mrb[3].mxu1  ;;  %v423_v21 = vsel %vm421_vm5, %v388_v19, -inf  ;;  %v398_v22 = vsel %vm395_vm6, %v388_v19, -inf }
 0x206   :  { %426 = vmax.xlane.f32.xlu1 %v423_v21  ;;  %401 = vmax.xlane.f32.xlu0 %v398_v22 }
 0x28f   :  { %v425_v23 = vpop.xlane.xlu1 %424  ;;  %v400_v24 = vpop.xlane.xlu0 %399 }
 0x290   :  { %v428_v25 = vsub.f32 %v422_v17, %v425_v23  ;;  %v403_v26 = vsub.f32 %v397_v18, %v400_v24 }
 0x292   :  { %v405_v27 = vmul.f32 1.442695, %v403_v26  ;;  %v430_v30 = vmul.f32 1.442695, %v428_v25 }
 0x293   :  { %v427_v28 = vpop.xlane.xlu1 %426  ;;  %v402_v29 = vpop.xlane.xlu0 %401 }
 0x294   :  { %v404_v31 = vsub.f32 %v398_v22, %v402_v29  ;;  %596 = vpow2.f32 %v405_v27  ;;  %v429_v32 = vsub.f32 %v423_v21, %v427_v28 }
 0x295   :  { %598 = vpow2.f32 %v430_v30 }
 0x296   :  { %v407_v33 = vmul.f32 1.442695, %v404_v31  ;;  %v432_v34 = vmul.f32 1.442695, %v429_v32 }
 0x298   :  { %600 = vpow2.f32 %v407_v33 }
 0x299   :  { %602 = vpow2.f32 %v432_v34 }
 0x29e   :  { %v597_v35 = vpop.eup %596 }
 0x29f   :  { %409 = vadd.xlane.f32.xlu0 %v597_v35  ;;  %v599_v36 = vpop.eup %598 }
 0x2a2   :  { %v601_v37 = vpop.eup %600 }
 0x2a3   :  { %434 = vadd.xlane.f32.xlu0 %v599_v36  ;;  %411 = vadd.xlane.f32.xlu1 %v601_v37  ;;  %v603_v38 = vpop.eup %602 }
 0x2a7   :  { %436 = vadd.xlane.f32.xlu1 %v603_v38 }
 0x32c   :  { %v410_v39 = vpop.xlane.xlu0 %409 }
 0x32d   :  { %604 = vrcp.f32 %v410_v39 }
 0x330   :  { %v412_v40 = vpop.xlane.xlu1 %411  ;;  %v435_v41 = vpop.xlane.xlu0 %434 }
 0x331   :  { %606 = vrcp.f32 %v435_v41 }
 0x332   :  { %608 = vrcp.f32 %v412_v40 }
 0x334   :  { %v437_v42 = vpop.xlane.xlu1 %436 }
 0x335   :  { %610 = vrcp.f32 %v437_v42 }
 0x337   :  { %v605_v43 = vpop.eup %604 }
 0x338   :  { %v414_v46 = vmul.f32 %v605_v43, %v597_v35 }
 0x33b   :  { %v607_v44 = vpop.eup %606 }
 0x33c   :  { %v609_v45 = vpop.eup %608  ;;  %v439_v47 = vmul.f32 %v607_v44, %v599_v36 }
 0x33d   :  { %v416_v50 = vmul.f32 %v609_v45, %v601_v37 }
 0x33e   :  { %v442_v49 = vadd.f32 %v439_v47, %v414_v46 }
 0x33f   :  { %v611_v48 = vpop.eup %610 }
 0x340   :  { %v441_v51 = vmul.f32 %v611_v48, %v603_v38  ;;  %444 = vst [vmem:[%s748_s4] sm:$0xff] %v442_v49 }
 0x342   :  { %v443_v52 = vadd.f32 %v441_v51, %v416_v50 }
 0x344   :  { %445 = vst [vmem:[%s748_s4 + $0x8] sm:$0xff] %v443_v52 }

</bundles_post_ra>
